<compile_context>
chip_gen: v6e
topology: v6e:2x2x1
jax: 0.10.0
libtpu: 0.0.40
codegen_flags: <defaults>
</compile_context>

<pallas_src>
import functools
import math

import jax
import jax.numpy as jnp
import numpy as np
from jax.experimental import pallas as pl
from jax.experimental.pallas import tpu as pltpu


# --------------------------------------------------------------------------
# Kernel
# --------------------------------------------------------------------------
def attn_block_kernel(x_ref, onehot_ref, aff_ref, wqkv_ref, wp_ref, o_ref,
                      q_sc, k_sc, v_sc, *, tq, tk, exp_dtype, recip_approx):
    # x_ref: (F, N, C) tokens of F (b, t) frames, float32.
    F, N, C = x_ref.shape
    G = onehot_ref.shape[1]
    nq = N // tq          # query/token tiles
    nk = N // tk          # KV chunks
    denom = float(N) * float(C // G)

    onehot = onehot_ref[...]                        # (C, G) channel->group one-hot
    aff = aff_ref[...]                              # (8, C) packed rows
    gamma, beta = aff[0:1], aff[1:2]                # (1, C)
    bias_qkv = jnp.concatenate([aff[2:3], aff[3:4], aff[4:5]], axis=-1)   # (1, 3C)
    bp = aff[5:6]                                   # (1, C)

    bt_dims = (((1,), (1,)), ((), ()))              # contract G of both ("trans_b")

    # ---- GroupNorm stats: two-pass (mean, then centered variance), streamed
    #      over token chunks so only one (F, tq, C) slab is live at a time ----
    def colsum_body(i, acc):
        c0 = pl.multiple_of(i * tq, tq)
        return acc + jnp.sum(x_ref[:, pl.ds(c0, tq), :], axis=1)
    colsum = jax.lax.fori_loop(0, nq, colsum_body,
                               jnp.zeros((F, C), jnp.float32), unroll=nq <= 2)
    mean_g = jnp.dot(colsum, onehot, preferred_element_type=jnp.float32) / denom
    mean_c = jax.lax.dot_general(mean_g, onehot, bt_dims,
                                 preferred_element_type=jnp.float32)      # (F, C)

    def colsq_body(i, acc):
        c0 = pl.multiple_of(i * tq, tq)
        xm = x_ref[:, pl.ds(c0, tq), :] - mean_c[:, None, :]
        return acc + jnp.sum(xm * xm, axis=1)
    colsq = jax.lax.fori_loop(0, nq, colsq_body,
                              jnp.zeros((F, C), jnp.float32), unroll=nq <= 2)
    var_g = jnp.dot(colsq, onehot, preferred_element_type=jnp.float32) / denom
    inv_c = jax.lax.dot_general(jax.lax.rsqrt(var_g + 1e-6), onehot, bt_dims,
                                preferred_element_type=jnp.float32)       # (F, C)
    scale_b = (inv_c * gamma)[:, None, :]           # affine gamma folded, (F, 1, C)
    mean_b = mean_c[:, None, :]                     # (F, 1, C)
    beta_b = beta[None]                             # (1, 1, C)

    # ---- normalize + fused q/k/v projection, written chunk-by-chunk into bf16
    #      scratch: no full-frame f32 qkv, no duplicate f32/bf16 q/k/v copies ----
    @pl.loop(0, nq)
    def _(i):
        c0 = pl.multiple_of(i * tq, tq)
        xn = ((x_ref[:, pl.ds(c0, tq), :] - mean_b) * scale_b
              + beta_b).astype(jnp.bfloat16)                              # (F, tq, C)
        qkv = jnp.dot(xn.reshape(F * tq, C), wqkv_ref[...],
                      preferred_element_type=jnp.float32)                 # (F*tq, 3C)
        qkv = (qkv + bias_qkv).astype(jnp.bfloat16).reshape(F, tq, 3 * C)
        q_sc[:, pl.ds(c0, tq), :] = qkv[:, :, :C]
        k_sc[:, pl.ds(c0, tq), :] = qkv[:, :, C:2 * C]
        v_sc[:, pl.ds(c0, tq), :] = qkv[:, :, 2 * C:]

    # ---- attention + proj_out + residual, one Q tile at a time ----
    sm_scale = 1.0 / math.sqrt(C)
    qk_dims = (((2,), (2,)), ((0,), (0,)))          # contract C, batch over frames
    pv_dims = (((2,), (1,)), ((0,), (0,)))          # contract KV chunk, batch frames

    @pl.loop(0, nq)
    def _(i):
        q0 = pl.multiple_of(i * tq, tq)
        qt = q_sc[:, pl.ds(q0, tq), :]              # (F, tq, C) bf16

        if nk == 1:
            # single-KV-chunk fast path: plain softmax, no online rescale passes
            s = jax.lax.dot_general(qt, k_sc[...], qk_dims,
                                    preferred_element_type=jnp.float32) * sm_scale
            m = jnp.max(s, axis=-1, keepdims=True)
            p = jnp.exp((s - m).astype(exp_dtype))
            l = jnp.sum(p.astype(jnp.float32), axis=-1, keepdims=True)
            acc = jax.lax.dot_general(p.astype(jnp.bfloat16), v_sc[...], pv_dims,
                                      preferred_element_type=jnp.float32)
        else:
            def kv_body(j, carry):
                m, l, acc = carry
                k0 = pl.multiple_of(j * tk, tk)
                kj = k_sc[:, pl.ds(k0, tk), :]
                vj = v_sc[:, pl.ds(k0, tk), :]
                s = jax.lax.dot_general(qt, kj, qk_dims,
                                        preferred_element_type=jnp.float32) * sm_scale
                m_new = jnp.maximum(m, jnp.max(s, axis=-1, keepdims=True))
                alpha = jnp.exp(m - m_new)
                p = jnp.exp((s - m_new).astype(exp_dtype))
                l = alpha * l + jnp.sum(p.astype(jnp.float32), axis=-1, keepdims=True)
                acc = alpha * acc + jax.lax.dot_general(
                    p.astype(jnp.bfloat16), vj, pv_dims,
                    preferred_element_type=jnp.float32)
                return m_new, l, acc
            carry0 = (jnp.full((F, tq, 1), -jnp.inf, jnp.float32),
                      jnp.zeros((F, tq, 1), jnp.float32),
                      jnp.zeros((F, tq, C), jnp.float32))
            _, l, acc = jax.lax.fori_loop(0, nk, kv_body, carry0, unroll=nk <= 4)

        attn = acc * pl.reciprocal(l, approx=recip_approx)                # (F, tq, C)
        h = jnp.dot(attn.reshape(F * tq, C).astype(jnp.bfloat16), wp_ref[...],
                    preferred_element_type=jnp.float32) + bp              # (F*tq, C)
        o_ref[:, pl.ds(q0, tq), :] = (x_ref[:, pl.ds(q0, tq), :]
                                      + h.reshape(F, tq, C))


# --------------------------------------------------------------------------
# Generation-aware sizing helpers
# --------------------------------------------------------------------------
def _generation_info():
    try:
        vmem_cap = int(pltpu.get_tpu_info().vmem_capacity_bytes)
    except Exception:
        vmem_cap = 64 << 20            # conservative: assume smallest (v7x-class) VMEM
    kind = ''
    try:
        kind = jax.devices()[0].device_kind.lower()
    except Exception:
        pass
    small_vmem = vmem_cap <= (64 << 20) or 'v7' in kind   # v7x: 64 MiB / TC, 2 TCs
    is_v5 = 'v5' in kind
    return {
        'vmem_cap': vmem_cap,
        'row_target': 256 if is_v5 else 512,      # v5e MXU 128x128; v6e/v7x 256x256
        'min_grid_steps': 4 if small_vmem else 2,  # 2 steps per TC on v7x
        'fn_cap': 1024 if small_vmem else 2048,
        'block_cap': (4 << 20) if small_vmem else (8 << 20),
        'bf16_eup': ('v6' in kind) or ('v7' in kind),   # bf16 EUP exp path
    }


def _pick_tile(n, candidates):
    for t in candidates:
        if n % t == 0:
            return t
    return n


def _pick_frames_per_step(BT, N, C, gen):
    """Batch frames per grid step so the projection matmuls see enough rows to
    fill the MXU, while keeping enough grid steps (pipelining + megacore) and a
    generation-appropriate per-step block footprint."""
    if N % 8 != 0:
        return 1          # keep in-kernel (F*tq, C) reshapes sublane-aligned
    best = 1
    for f in range(1, BT + 1):
        if BT % f:
            continue
        if f > 1 and BT // f < min(gen['min_grid_steps'], BT):
            continue
        if f * N > gen['fn_cap'] or f * N * C * 4 > gen['block_cap']:
            continue
        best = f
        if f * N >= gen['row_target']:
            break
    return best


def _vmem_estimate(f, N, C, G, tq, tk, single_buffer_weights):
    tok = f * N * C
    io_bytes = 2 * 2 * tok * 4                     # x in + out blocks, double-buffered f32
    scratch = 3 * tok * 2                          # q/k/v bf16 VMEM scratch
    wmul = 1 if single_buffer_weights else 2
    weights = wmul * ((C * 3 * C + C * C) * 2 + (C * G + 8 * C) * 4)
    # peak live chunk transients: norm+qkv-projection phase vs attention phase
    proj_phase = f * tq * (C * (4 + 2) + 3 * C * (4 + 2))
    attn_phase = f * tq * (C * (2 + 4 + 4 + 4) + tk * (4 + 4 + 2))
    return io_bytes + scratch + weights + max(proj_phase, attn_phase)


# --------------------------------------------------------------------------
# Wrapper
# --------------------------------------------------------------------------
def attn_block_forward(x, params, frames_per_step=None):
    """x: (B, C, T, H, W) float32 — PyTorch NCTHW layout."""
    B, C, T, H, W = x.shape
    N = H * W
    BT = B * T
    G = params['onehot'].shape[1]
    gen = _generation_info()
    f_step = frames_per_step or _pick_frames_per_step(BT, N, C, gen)
    assert BT % f_step == 0

    # Lane-dense tiles; never fall through to 1-wide KV chunks.
    tq = _pick_tile(N, (512, 256, 128, 64, 32, 16, 8))
    tk = N if N <= 1024 else _pick_tile(N, (512, 256, 128))
    # TODO(synk): pad the token axis to a multiple of 128 with masked scores when
    # H*W has no lane-dense divisor, instead of whole-frame fallback tiles.

    # NCTHW -> (B*T, H*W, C); done once in XLA.
    # TODO(synk): keep the surrounding model channels-last to drop this HBM
    # relayout round-trip (roughly doubles input/output traffic, worst on v5e).
    xt = jnp.transpose(x, (0, 2, 3, 4, 1)).reshape(BT, N, C).astype(jnp.float32)

    kernel = functools.partial(
        attn_block_kernel, tq=tq, tk=tk,
        exp_dtype=jnp.bfloat16 if gen['bf16_eup'] else jnp.float32,
        recip_approx=N < 4096)

    def build(single_buffer_weights):
        def const_spec(shape):
            if single_buffer_weights:
                return pl.BlockSpec(shape, lambda i: (0,) * len(shape),
                                    pipeline_mode=pl.Buffered(1))
            return pl.BlockSpec(shape, lambda i: (0,) * len(shape))

        in_specs = [
            pl.BlockSpec((f_step, N, C), lambda i: (i, 0, 0)),   # x tokens
            const_spec((C, G)),                                  # group one-hot
            const_spec((8, C)),                                  # gamma/beta/biases
            const_spec((C, 3 * C)),                              # fused qkv weight (bf16)
            const_spec((C, C)),                                  # proj_out weight (bf16)
        ]
        est = _vmem_estimate(f_step, N, C, G, tq, tk, single_buffer_weights)
        cap = min(int(gen['vmem_cap'] * 0.85), 100 << 20)        # ~54 MiB on v7x
        vmem_limit = int(min(cap, max(min(32 << 20, cap), est * 1.2)))

        return pl.pallas_call(
            kernel,
            out_shape=jax.ShapeDtypeStruct((BT, N, C), jnp.float32),
            grid_spec=pltpu.PrefetchScalarGridSpec(
                num_scalar_prefetch=0,
                grid=(BT // f_step,),
                in_specs=in_specs,
                out_specs=pl.BlockSpec((f_step, N, C), lambda i: (i, 0, 0)),
                scratch_shapes=[pltpu.VMEM((f_step, N, C), jnp.bfloat16)] * 3,
            ),
            compiler_params=pltpu.CompilerParams(
                dimension_semantics=("parallel",),
                vmem_limit_bytes=vmem_limit,
            ),
        )

    args = (xt, params['onehot'], params['affine'], params['wqkv_t'], params['wp_t'])
    try:
        y = build(True)(*args)
    except Exception:
        # pipeline_mode=pl.Buffered(1) not supported on this jax/Mosaic build.
        y = build(False)(*args)

    return jnp.transpose(y.reshape(B, T, H, W, C), (0, 4, 1, 2, 3))


# --------------------------------------------------------------------------
# Parameters & pure-JAX reference
# --------------------------------------------------------------------------
def make_params(key, C):
    """Deterministic synthetic parameters matching AttnBlock.__init__ shapes."""
    G = 32 if C % 32 == 0 else 24
    assert C % G == 0
    cg = C // G
    ks = jax.random.split(key, 10)
    std = 1.0 / math.sqrt(C)
    # PyTorch Conv 1x1 weights are (out, in); kernel consumes the transpose (in, out).
    wq = jax.random.normal(ks[0], (C, C), jnp.float32) * std
    wk = jax.random.normal(ks[1], (C, C), jnp.float32) * std
    wv = jax.random.normal(ks[2], (C, C), jnp.float32) * std
    wp = jax.random.normal(ks[3], (C, C), jnp.float32) * std
    bq = jax.random.normal(ks[4], (C,), jnp.float32) * 0.05
    bk = jax.random.normal(ks[5], (C,), jnp.float32) * 0.05
    bv = jax.random.normal(ks[6], (C,), jnp.float32) * 0.05
    bp = jax.random.normal(ks[7], (C,), jnp.float32) * 0.05
    gamma = 1.0 + 0.1 * jax.random.normal(ks[8], (C,), jnp.float32)
    beta = 0.1 * jax.random.normal(ks[9], (C,), jnp.float32)
    onehot = (jnp.arange(C)[:, None] // cg == jnp.arange(G)[None, :]).astype(jnp.float32)

    wqkv_t = jnp.concatenate([wq.T, wk.T, wv.T], axis=1).astype(jnp.bfloat16)  # (C, 3C)
    wp_t = wp.T.astype(jnp.bfloat16)                                           # (C, C)
    affine = jnp.zeros((8, C), jnp.float32)
    affine = affine.at[0].set(gamma).at[1].set(beta)
    affine = affine.at[2].set(bq).at[3].set(bk).at[4].set(bv).at[5].set(bp)

    return {
        'G': G, 'onehot': onehot, 'affine': affine,
        'wqkv_t': wqkv_t, 'wp_t': wp_t,
        'gamma': gamma, 'beta': beta,
        'wq': wq, 'wk': wk, 'wv': wv, 'wp': wp,
        'bq': bq, 'bk': bk, 'bv': bv, 'bp': bp,
    }


def reference_forward(x, params):
    """Pure-JAX f32 reference mirroring the PyTorch module semantics."""
    B, C, T, H, W = x.shape
    N = H * W
    G = params['G']
    cg = C // G
    xt = jnp.transpose(x, (0, 2, 1, 3, 4)).reshape(B * T, C, N)      # (BT, C, N)

    xg = xt.reshape(B * T, G, cg * N)
    mean = xg.mean(-1, keepdims=True)
    var = xg.var(-1, keepdims=True)
    xn = (xg - mean) / jnp.sqrt(var + 1e-6)
    xn = xn.reshape(B * T, C, N) * params['gamma'].reshape(1, C, 1) \
         + params['beta'].reshape(1, C, 1)

    tok = jnp.transpose(xn, (0, 2, 1))                               # (BT, N, C)
    q = tok @ params['wq'].T + params['bq']
    k = tok @ params['wk'].T + params['bk']
    v = tok @ params['wv'].T + params['bv']
    scores = (q @ jnp.transpose(k, (0, 2, 1))) / math.sqrt(C)
    p = jax.nn.softmax(scores, axis=-1)
    attn = p @ v                                                     # (BT, N, C)
    h = attn @ params['wp'].T + params['bp']
    xt_tok = jnp.transpose(x, (0, 2, 3, 4, 1)).reshape(B * T, N, C)
    out = xt_tok + h
    return jnp.transpose(out.reshape(B, T, H, W, C), (0, 4, 1, 2, 3))


if __name__ == "__main__":
    B, C, T, H, W = 2, 32, 2, 8, 8   # C must be divisible by 32 (GroupNorm groups)
    key = jax.random.PRNGKey(0)
    kx, kp = jax.random.split(key)
    x = jax.random.normal(kx, (B, C, T, H, W), jnp.float32)
    params = make_params(kp, C)

    out = jax.block_until_ready(attn_block_forward(x, params))
    ref = jax.block_until_ready(reference_forward(x, params))

    # bf16 MXU operands (+ bf16 exp on v6e/v7x) + approx reciprocal -> looser
    # tolerance than a pure-f32 path.
    np.testing.assert_allclose(np.asarray(out), np.asarray(ref), rtol=3e-2, atol=3e-2)

    print("KERNEL_OK")
</pallas_src>

<mosaic_0001>
module attributes {stable_mosaic.version = 11 : i64} {
  func.func @attn_block_kernel(%arg0: i32, %arg1: memref<1x64x32xf32, #tpu.memory_space<vmem>>, %arg2: memref<32x32xf32, #tpu.memory_space<vmem>>, %arg3: memref<8x32xf32, #tpu.memory_space<vmem>>, %arg4: memref<32x96xbf16, #tpu.memory_space<vmem>>, %arg5: memref<32x32xbf16, #tpu.memory_space<vmem>>, %arg6: memref<1x64x32xf32, #tpu.memory_space<vmem>>, %arg7: memref<1x64x32xbf16, #tpu.memory_space<vmem>>, %arg8: memref<1x64x32xbf16, #tpu.memory_space<vmem>>, %arg9: memref<1x64x32xbf16, #tpu.memory_space<vmem>>) attributes {dimension_semantics = [#tpu.dimension_semantics<parallel>], iteration_bounds = array<i64: 4>, scalar_prefetch = 0 : i64, scratch_operands = 3 : i64, tpu.core_type = #tpu.core_type<tc>, window_params = [{transform_indices = @transform_0, window_bounds = array<i64: 1, 64, 32>}, {pipeline_mode = #tpu.pipeline_mode<synchronous>, transform_indices = @transform_1, window_bounds = array<i64: 32, 32>}, {pipeline_mode = #tpu.pipeline_mode<synchronous>, transform_indices = @transform_2, window_bounds = array<i64: 8, 32>}, {pipeline_mode = #tpu.pipeline_mode<synchronous>, transform_indices = @transform_3, window_bounds = array<i64: 32, 96>}, {pipeline_mode = #tpu.pipeline_mode<synchronous>, transform_indices = @transform_4, window_bounds = array<i64: 32, 32>}, {transform_indices = @transform_5, window_bounds = array<i64: 1, 64, 32>}]} {
    %c0 = arith.constant 0 : index
    %c0_0 = arith.constant 0 : index
    %0 = vector.load %arg2[%c0, %c0_0] : memref<32x32xf32, #tpu.memory_space<vmem>>, vector<32x32xf32>
    %c0_1 = arith.constant 0 : index
    %c0_2 = arith.constant 0 : index
    %1 = vector.load %arg3[%c0_1, %c0_2] : memref<8x32xf32, #tpu.memory_space<vmem>>, vector<8x32xf32>
    %2 = vector.extract_strided_slice %1 {offsets = [0, 0], sizes = [1, 32], strides = [1, 1]} : vector<8x32xf32> to vector<1x32xf32>
    %3 = vector.extract_strided_slice %1 {offsets = [1, 0], sizes = [1, 32], strides = [1, 1]} : vector<8x32xf32> to vector<1x32xf32>
    %4 = vector.extract_strided_slice %1 {offsets = [2, 0], sizes = [1, 32], strides = [1, 1]} : vector<8x32xf32> to vector<1x32xf32>
    %5 = vector.extract_strided_slice %1 {offsets = [3, 0], sizes = [1, 32], strides = [1, 1]} : vector<8x32xf32> to vector<1x32xf32>
    %6 = vector.extract_strided_slice %1 {offsets = [4, 0], sizes = [1, 32], strides = [1, 1]} : vector<8x32xf32> to vector<1x32xf32>
    %7 = tpu.concatenate %4, %5, %6 in 1 : vector<1x32xf32>, vector<1x32xf32>, vector<1x32xf32> -> vector<1x96xf32>
    %8 = vector.extract_strided_slice %1 {offsets = [5, 0], sizes = [1, 32], strides = [1, 1]} : vector<8x32xf32> to vector<1x32xf32>
    %cst = arith.constant 0.000000e+00 : f32
    %9 = vector.broadcast %cst : f32 to vector<1x32xf32>
    %c0_i32 = arith.constant 0 : i32
    %c64_i32 = arith.constant 64 : i32
    %10 = arith.muli %c0_i32, %c64_i32 : i32
    %11 = tpu.assume_multiple %10, 64 : i32
    %c0_3 = arith.constant 0 : index
    %12 = arith.index_cast %11 : i32 to index
    %c0_4 = arith.constant 0 : index
    %13 = vector.load %arg1[%c0_3, %12, %c0_4] : memref<1x64x32xf32, #tpu.memory_space<vmem>>, vector<1x64x32xf32>
    %cst_5 = arith.constant dense<0.000000e+00> : vector<1x32xf32>
    %14 = vector.multi_reduction <add>, %13, %cst_5 [1] : vector<1x64x32xf32> to vector<1x32xf32>
    %15 = arith.addf %9, %14 : vector<1x32xf32>
    %c1_i32 = arith.constant 1 : i32
    %cst_6 = arith.constant dense<0.000000e+00> : vector<1x32xf32>
    %16 = tpu.matmul %15, %0, %cst_6 {dimension_numbers = #tpu.dot_dimension_numbers<[1], [0], [0], [1], [0, 0, 1, 1], [], []>} : vector<1x32xf32>, vector<32x32xf32>, vector<1x32xf32> -> vector<1x32xf32>
    %cst_7 = arith.constant 6.400000e+01 : f32
    %17 = vector.broadcast %cst_7 : f32 to vector<1x32xf32>
    %18 = arith.divf %16, %17 : vector<1x32xf32>
    %cst_8 = arith.constant dense<0.000000e+00> : vector<1x32xf32>
    %19 = tpu.matmul %18, %0, %cst_8 {dimension_numbers = #tpu.dot_dimension_numbers<[1], [1], [0], [0], [0, 0, 1, 0], [], []>} : vector<1x32xf32>, vector<32x32xf32>, vector<1x32xf32> -> vector<1x32xf32>
    %cst_9 = arith.constant 0.000000e+00 : f32
    %20 = vector.broadcast %cst_9 : f32 to vector<1x32xf32>
    %c0_i32_10 = arith.constant 0 : i32
    %c64_i32_11 = arith.constant 64 : i32
    %21 = arith.muli %c0_i32_10, %c64_i32_11 : i32
    %22 = tpu.assume_multiple %21, 64 : i32
    %c0_12 = arith.constant 0 : index
    %23 = arith.index_cast %22 : i32 to index
    %c0_13 = arith.constant 0 : index
    %24 = vector.load %arg1[%c0_12, %23, %c0_13] : memref<1x64x32xf32, #tpu.memory_space<vmem>>, vector<1x64x32xf32>
    %25 = vector.shape_cast %19 : vector<1x32xf32> to vector<1x1x32xf32>
    %26 = vector.broadcast %25 : vector<1x1x32xf32> to vector<1x64x32xf32>
    %27 = arith.subf %24, %26 : vector<1x64x32xf32>
    %28 = arith.mulf %27, %27 : vector<1x64x32xf32>
    %cst_14 = arith.constant dense<0.000000e+00> : vector<1x32xf32>
    %29 = vector.multi_reduction <add>, %28, %cst_14 [1] : vector<1x64x32xf32> to vector<1x32xf32>
    %30 = arith.addf %20, %29 : vector<1x32xf32>
    %c1_i32_15 = arith.constant 1 : i32
    %cst_16 = arith.constant dense<0.000000e+00> : vector<1x32xf32>
    %31 = tpu.matmul %30, %0, %cst_16 {dimension_numbers = #tpu.dot_dimension_numbers<[1], [0], [0], [1], [0, 0, 1, 1], [], []>} : vector<1x32xf32>, vector<32x32xf32>, vector<1x32xf32> -> vector<1x32xf32>
    %cst_17 = arith.constant 6.400000e+01 : f32
    %32 = vector.broadcast %cst_17 : f32 to vector<1x32xf32>
    %33 = arith.divf %31, %32 : vector<1x32xf32>
    %cst_18 = arith.constant 9.99999997E-7 : f32
    %34 = vector.broadcast %cst_18 : f32 to vector<1x32xf32>
    %35 = arith.addf %33, %34 : vector<1x32xf32>
    %36 = math.rsqrt %35 : vector<1x32xf32>
    %cst_19 = arith.constant dense<0.000000e+00> : vector<1x32xf32>
    %37 = tpu.matmul %36, %0, %cst_19 {dimension_numbers = #tpu.dot_dimension_numbers<[1], [1], [0], [0], [0, 0, 1, 0], [], []>} : vector<1x32xf32>, vector<32x32xf32>, vector<1x32xf32> -> vector<1x32xf32>
    %38 = arith.mulf %37, %2 : vector<1x32xf32>
    %39 = vector.shape_cast %38 : vector<1x32xf32> to vector<1x1x32xf32>
    %40 = vector.shape_cast %19 : vector<1x32xf32> to vector<1x1x32xf32>
    %41 = vector.shape_cast %3 : vector<1x32xf32> to vector<1x1x32xf32>
    %c0_i32_20 = arith.constant 0 : i32
    %c1_i32_21 = arith.constant 1 : i32
    %42 = arith.muli %c0_i32_20, %c1_i32_21 : i32
    %c0_i32_22 = arith.constant 0 : i32
    %43 = arith.addi %c0_i32_22, %42 : i32
    %c64_i32_23 = arith.constant 64 : i32
    %44 = arith.muli %43, %c64_i32_23 : i32
    %45 = tpu.assume_multiple %44, 64 : i32
    %c0_24 = arith.constant 0 : index
    %46 = arith.index_cast %45 : i32 to index
    %c0_25 = arith.constant 0 : index
    %47 = vector.load %arg1[%c0_24, %46, %c0_25] : memref<1x64x32xf32, #tpu.memory_space<vmem>>, vector<1x64x32xf32>
    %48 = vector.broadcast %40 : vector<1x1x32xf32> to vector<1x64x32xf32>
    %49 = arith.subf %47, %48 : vector<1x64x32xf32>
    %50 = vector.broadcast %39 : vector<1x1x32xf32> to vector<1x64x32xf32>
    %51 = arith.mulf %49, %50 : vector<1x64x32xf32>
    %52 = vector.broadcast %41 : vector<1x1x32xf32> to vector<1x64x32xf32>
    %53 = arith.addf %51, %52 : vector<1x64x32xf32>
    %54 = arith.truncf %53 : vector<1x64x32xf32> to vector<1x64x32xbf16>
    %55 = vector.shape_cast %54 : vector<1x64x32xbf16> to vector<64x32xbf16>
    %c0_26 = arith.constant 0 : index
    %c0_27 = arith.constant 0 : index
    %56 = vector.load %arg4[%c0_26, %c0_27] : memref<32x96xbf16, #tpu.memory_space<vmem>>, vector<32x96xbf16>
    %cst_28 = arith.constant dense<0.000000e+00> : vector<64x96xf32>
    %57 = tpu.matmul %55, %56, %cst_28 {dimension_numbers = #tpu.dot_dimension_numbers<[1], [0], [0], [1], [0, 0, 1, 1], [], []>} : vector<64x32xbf16>, vector<32x96xbf16>, vector<64x96xf32> -> vector<64x96xf32>
    %58 = vector.broadcast %7 : vector<1x96xf32> to vector<64x96xf32>
    %59 = arith.addf %57, %58 : vector<64x96xf32>
    %60 = arith.truncf %59 : vector<64x96xf32> to vector<64x96xbf16>
    %61 = vector.shape_cast %60 : vector<64x96xbf16> to vector<1x64x96xbf16>
    %62 = vector.extract_strided_slice %61 {offsets = [0, 0, 0], sizes = [1, 64, 32], strides = [1, 1, 1]} : vector<1x64x96xbf16> to vector<1x64x32xbf16>
    %c0_29 = arith.constant 0 : index
    %63 = arith.index_cast %45 : i32 to index
    %c0_30 = arith.constant 0 : index
    %64 = vector.load %arg7[%c0_29, %63, %c0_30] : memref<1x64x32xbf16, #tpu.memory_space<vmem>>, vector<1x64x32xbf16>
    tpu.vector_store %arg7[%c0_29, %63, %c0_30], %62 {strides = array<i32>} : memref<1x64x32xbf16, #tpu.memory_space<vmem>>, vector<1x64x32xbf16>,
    %65 = vector.extract_strided_slice %61 {offsets = [0, 0, 32], sizes = [1, 64, 32], strides = [1, 1, 1]} : vector<1x64x96xbf16> to vector<1x64x32xbf16>
    %c0_31 = arith.constant 0 : index
    %66 = arith.index_cast %45 : i32 to index
    %c0_32 = arith.constant 0 : index
    %67 = vector.load %arg8[%c0_31, %66, %c0_32] : memref<1x64x32xbf16, #tpu.memory_space<vmem>>, vector<1x64x32xbf16>
    tpu.vector_store %arg8[%c0_31, %66, %c0_32], %65 {strides = array<i32>} : memref<1x64x32xbf16, #tpu.memory_space<vmem>>, vector<1x64x32xbf16>,
    %68 = vector.extract_strided_slice %61 {offsets = [0, 0, 64], sizes = [1, 64, 32], strides = [1, 1, 1]} : vector<1x64x96xbf16> to vector<1x64x32xbf16>
    %c0_33 = arith.constant 0 : index
    %69 = arith.index_cast %45 : i32 to index
    %c0_34 = arith.constant 0 : index
    %70 = vector.load %arg9[%c0_33, %69, %c0_34] : memref<1x64x32xbf16, #tpu.memory_space<vmem>>, vector<1x64x32xbf16>
    tpu.vector_store %arg9[%c0_33, %69, %c0_34], %68 {strides = array<i32>} : memref<1x64x32xbf16, #tpu.memory_space<vmem>>, vector<1x64x32xbf16>,
    %c1_i32_35 = arith.constant 1 : i32
    %c0_i32_36 = arith.constant 0 : i32
    %c1_i32_37 = arith.constant 1 : i32
    %71 = arith.muli %c0_i32_36, %c1_i32_37 : i32
    %c0_i32_38 = arith.constant 0 : i32
    %72 = arith.addi %c0_i32_38, %71 : i32
    %c64_i32_39 = arith.constant 64 : i32
    %73 = arith.muli %72, %c64_i32_39 : i32
    %74 = tpu.assume_multiple %73, 64 : i32
    %c0_40 = arith.constant 0 : index
    %75 = arith.index_cast %74 : i32 to index
    %c0_41 = arith.constant 0 : index
    %76 = vector.load %arg7[%c0_40, %75, %c0_41] : memref<1x64x32xbf16, #tpu.memory_space<vmem>>, vector<1x64x32xbf16>
    %c0_42 = arith.constant 0 : index
    %c0_43 = arith.constant 0 : index
    %c0_44 = arith.constant 0 : index
    %77 = vector.load %arg8[%c0_42, %c0_43, %c0_44] : memref<1x64x32xbf16, #tpu.memory_space<vmem>>, vector<1x64x32xbf16>
    %cst_45 = arith.constant dense<0.000000e+00> : vector<1x64x64xf32>
    %78 = tpu.matmul %76, %77, %cst_45 {dimension_numbers = #tpu.dot_dimension_numbers<[2], [2], [1], [1], [0, 0, 0, 1, 1, 1], [0], [0]>} : vector<1x64x32xbf16>, vector<1x64x32xbf16>, vector<1x64x64xf32> -> vector<1x64x64xf32>
    %cst_46 = arith.constant 0.176776692 : f32
    %79 = vector.broadcast %cst_46 : f32 to vector<1x64x64xf32>
    %80 = arith.mulf %78, %79 : vector<1x64x64xf32>
    %cst_47 = arith.constant dense<0xFF800000> : vector<1x64xf32>
    %81 = vector.multi_reduction <maximumf>, %80, %cst_47 [2] : vector<1x64x64xf32> to vector<1x64xf32>
    %82 = vector.shape_cast %81 : vector<1x64xf32> to vector<1x64x1xf32>
    %83 = vector.broadcast %82 : vector<1x64x1xf32> to vector<1x64x64xf32>
    %84 = arith.subf %80, %83 : vector<1x64x64xf32>
    %85 = math.exp %84 : vector<1x64x64xf32>
    %cst_48 = arith.constant dense<0.000000e+00> : vector<1x64xf32>
    %86 = vector.multi_reduction <add>, %85, %cst_48 [2] : vector<1x64x64xf32> to vector<1x64xf32>
    %87 = vector.shape_cast %86 : vector<1x64xf32> to vector<1x64x1xf32>
    %88 = arith.truncf %85 : vector<1x64x64xf32> to vector<1x64x64xbf16>
    %c0_49 = arith.constant 0 : index
    %c0_50 = arith.constant 0 : index
    %c0_51 = arith.constant 0 : index
    %89 = vector.load %arg9[%c0_49, %c0_50, %c0_51] : memref<1x64x32xbf16, #tpu.memory_space<vmem>>, vector<1x64x32xbf16>
    %cst_52 = arith.constant dense<0.000000e+00> : vector<1x64x32xf32>
    %90 = tpu.matmul %88, %89, %cst_52 {dimension_numbers = #tpu.dot_dimension_numbers<[2], [1], [1], [2], [0, 0, 0, 1, 1, 2], [0], [0]>} : vector<1x64x64xbf16>, vector<1x64x32xbf16>, vector<1x64x32xf32> -> vector<1x64x32xf32>
    %91 = tpu.reciprocal %87 {approx = true} : vector<1x64x1xf32> -> vector<1x64x1xf32>
    %92 = vector.broadcast %91 : vector<1x64x1xf32> to vector<1x64x32xf32>
    %93 = arith.mulf %90, %92 : vector<1x64x32xf32>
    %94 = vector.shape_cast %93 : vector<1x64x32xf32> to vector<64x32xf32>
    %95 = arith.truncf %94 : vector<64x32xf32> to vector<64x32xbf16>
    %c0_53 = arith.constant 0 : index
    %c0_54 = arith.constant 0 : index
    %96 = vector.load %arg5[%c0_53, %c0_54] : memref<32x32xbf16, #tpu.memory_space<vmem>>, vector<32x32xbf16>
    %cst_55 = arith.constant dense<0.000000e+00> : vector<64x32xf32>
    %97 = tpu.matmul %95, %96, %cst_55 {dimension_numbers = #tpu.dot_dimension_numbers<[1], [0], [0], [1], [0, 0, 1, 1], [], []>} : vector<64x32xbf16>, vector<32x32xbf16>, vector<64x32xf32> -> vector<64x32xf32>
    %98 = vector.broadcast %8 : vector<1x32xf32> to vector<64x32xf32>
    %99 = arith.addf %97, %98 : vector<64x32xf32>
    %c0_56 = arith.constant 0 : index
    %100 = arith.index_cast %74 : i32 to index
    %c0_57 = arith.constant 0 : index
    %101 = vector.load %arg1[%c0_56, %100, %c0_57] : memref<1x64x32xf32, #tpu.memory_space<vmem>>, vector<1x64x32xf32>
    %102 = vector.shape_cast %99 : vector<64x32xf32> to vector<1x64x32xf32>
    %103 = arith.addf %101, %102 : vector<1x64x32xf32>
    %c0_58 = arith.constant 0 : index
    %104 = arith.index_cast %74 : i32 to index
    %c0_59 = arith.constant 0 : index
    %105 = vector.load %arg6[%c0_58, %104, %c0_59] : memref<1x64x32xf32, #tpu.memory_space<vmem>>, vector<1x64x32xf32>
    tpu.vector_store %arg6[%c0_58, %104, %c0_59], %103 {strides = array<i32>} : memref<1x64x32xf32, #tpu.memory_space<vmem>>, vector<1x64x32xf32>,
    %c1_i32_60 = arith.constant 1 : i32
    return
  }
  func.func @transform_0(%arg0: i32) -> (i32, i32, i32) {
    %c0_i32 = arith.constant 0 : i32
    %c0_i32_0 = arith.constant 0 : i32
    %c0_i32_1 = arith.constant 0 : i32
    return %arg0, %c0_i32, %c0_i32_0 : i32, i32, i32
  }
  func.func @transform_1(%arg0: i32) -> (i32, i32) {
    %c0_i32 = arith.constant 0 : i32
    %c0_i32_0 = arith.constant 0 : i32
    %c0_i32_1 = arith.constant 0 : i32
    return %c0_i32, %c0_i32_0 : i32, i32
  }
  func.func @transform_2(%arg0: i32) -> (i32, i32) {
    %c0_i32 = arith.constant 0 : i32
    %c0_i32_0 = arith.constant 0 : i32
    %c0_i32_1 = arith.constant 0 : i32
    return %c0_i32, %c0_i32_0 : i32, i32
  }
  func.func @transform_3(%arg0: i32) -> (i32, i32) {
    %c0_i32 = arith.constant 0 : i32
    %c0_i32_0 = arith.constant 0 : i32
    %c0_i32_1 = arith.constant 0 : i32
    return %c0_i32, %c0_i32_0 : i32, i32
  }
  func.func @transform_4(%arg0: i32) -> (i32, i32) {
    %c0_i32 = arith.constant 0 : i32
    %c0_i32_0 = arith.constant 0 : i32
    %c0_i32_1 = arith.constant 0 : i32
    return %c0_i32, %c0_i32_0 : i32, i32
  }
  func.func @transform_5(%arg0: i32) -> (i32, i32, i32) {
    %c0_i32 = arith.constant 0 : i32
    %c0_i32_0 = arith.constant 0 : i32
    %c0_i32_1 = arith.constant 0 : i32
    return %arg0, %c0_i32, %c0_i32_0 : i32, i32, i32
  }
}

module attributes {stable_mosaic.version = 11 : i64} {
  func.func @attn_block_kernel(%arg0: i32, %arg1: memref<1x64x32xf32, #tpu.memory_space<vmem>>, %arg2: memref<32x32xf32, #tpu.memory_space<vmem>>, %arg3: memref<8x32xf32, #tpu.memory_space<vmem>>, %arg4: memref<32x96xbf16, #tpu.memory_space<vmem>>, %arg5: memref<32x32xbf16, #tpu.memory_space<vmem>>, %arg6: memref<1x64x32xf32, #tpu.memory_space<vmem>>, %arg7: memref<1x64x32xbf16, #tpu.memory_space<vmem>>, %arg8: memref<1x64x32xbf16, #tpu.memory_space<vmem>>, %arg9: memref<1x64x32xbf16, #tpu.memory_space<vmem>>) attributes {dimension_semantics = [#tpu.dimension_semantics<parallel>], iteration_bounds = array<i64: 4>, scalar_prefetch = 0 : i64, scratch_operands = 3 : i64, tpu.core_type = #tpu.core_type<tc>, window_params = [{transform_indices = @transform_0, window_bounds = array<i64: 1, 64, 32>}, {pipeline_mode = #tpu.pipeline_mode<synchronous>, transform_indices = @transform_1, window_bounds = array<i64: 32, 32>}, {pipeline_mode = #tpu.pipeline_mode<synchronous>, transform_indices = @transform_2, window_bounds = array<i64: 8, 32>}, {pipeline_mode = #tpu.pipeline_mode<synchronous>, transform_indices = @transform_3, window_bounds = array<i64: 32, 96>}, {pipeline_mode = #tpu.pipeline_mode<synchronous>, transform_indices = @transform_4, window_bounds = array<i64: 32, 32>}, {transform_indices = @transform_5, window_bounds = array<i64: 1, 64, 32>}]} {
    %c0 = arith.constant 0 : index
    %c0_0 = arith.constant 0 : index
    %0 = vector.load %arg2[%c0, %c0_0] : memref<32x32xf32, #tpu.memory_space<vmem>>, vector<32x32xf32>
    %c0_1 = arith.constant 0 : index
    %c0_2 = arith.constant 0 : index
    %1 = vector.load %arg3[%c0_1, %c0_2] : memref<8x32xf32, #tpu.memory_space<vmem>>, vector<8x32xf32>
    %2 = vector.extract_strided_slice %1 {offsets = [0, 0], sizes = [1, 32], strides = [1, 1]} : vector<8x32xf32> to vector<1x32xf32>
    %3 = vector.extract_strided_slice %1 {offsets = [1, 0], sizes = [1, 32], strides = [1, 1]} : vector<8x32xf32> to vector<1x32xf32>
    %4 = vector.extract_strided_slice %1 {offsets = [2, 0], sizes = [1, 32], strides = [1, 1]} : vector<8x32xf32> to vector<1x32xf32>
    %5 = vector.extract_strided_slice %1 {offsets = [3, 0], sizes = [1, 32], strides = [1, 1]} : vector<8x32xf32> to vector<1x32xf32>
    %6 = vector.extract_strided_slice %1 {offsets = [4, 0], sizes = [1, 32], strides = [1, 1]} : vector<8x32xf32> to vector<1x32xf32>
    %7 = tpu.concatenate %4, %5, %6 in 1 : vector<1x32xf32>, vector<1x32xf32>, vector<1x32xf32> -> vector<1x96xf32>
    %8 = vector.extract_strided_slice %1 {offsets = [5, 0], sizes = [1, 32], strides = [1, 1]} : vector<8x32xf32> to vector<1x32xf32>
    %cst = arith.constant 0.000000e+00 : f32
    %9 = vector.broadcast %cst : f32 to vector<1x32xf32>
    %c0_i32 = arith.constant 0 : i32
    %c64_i32 = arith.constant 64 : i32
    %10 = arith.muli %c0_i32, %c64_i32 : i32
    %11 = tpu.assume_multiple %10, 64 : i32
    %c0_3 = arith.constant 0 : index
    %12 = arith.index_cast %11 : i32 to index
    %c0_4 = arith.constant 0 : index
    %13 = vector.load %arg1[%c0_3, %12, %c0_4] : memref<1x64x32xf32, #tpu.memory_space<vmem>>, vector<1x64x32xf32>
    %cst_5 = arith.constant dense<0.000000e+00> : vector<1x32xf32>
    %14 = vector.multi_reduction <add>, %13, %cst_5 [1] : vector<1x64x32xf32> to vector<1x32xf32>
    %15 = arith.addf %9, %14 : vector<1x32xf32>
    %c1_i32 = arith.constant 1 : i32
    %cst_6 = arith.constant dense<0.000000e+00> : vector<1x32xf32>
    %16 = tpu.matmul %15, %0, %cst_6 {dimension_numbers = #tpu.dot_dimension_numbers<[1], [0], [0], [1], [0, 0, 1, 1], [], []>} : vector<1x32xf32>, vector<32x32xf32>, vector<1x32xf32> -> vector<1x32xf32>
    %cst_7 = arith.constant 6.400000e+01 : f32
    %17 = vector.broadcast %cst_7 : f32 to vector<1x32xf32>
    %18 = arith.divf %16, %17 : vector<1x32xf32>
    %cst_8 = arith.constant dense<0.000000e+00> : vector<1x32xf32>
    %19 = tpu.matmul %18, %0, %cst_8 {dimension_numbers = #tpu.dot_dimension_numbers<[1], [1], [0], [0], [0, 0, 1, 0], [], []>} : vector<1x32xf32>, vector<32x32xf32>, vector<1x32xf32> -> vector<1x32xf32>
    %cst_9 = arith.constant 0.000000e+00 : f32
    %20 = vector.broadcast %cst_9 : f32 to vector<1x32xf32>
    %c0_i32_10 = arith.constant 0 : i32
    %c64_i32_11 = arith.constant 64 : i32
    %21 = arith.muli %c0_i32_10, %c64_i32_11 : i32
    %22 = tpu.assume_multiple %21, 64 : i32
    %c0_12 = arith.constant 0 : index
    %23 = arith.index_cast %22 : i32 to index
    %c0_13 = arith.constant 0 : index
    %24 = vector.load %arg1[%c0_12, %23, %c0_13] : memref<1x64x32xf32, #tpu.memory_space<vmem>>, vector<1x64x32xf32>
    %25 = vector.shape_cast %19 : vector<1x32xf32> to vector<1x1x32xf32>
    %26 = vector.broadcast %25 : vector<1x1x32xf32> to vector<1x64x32xf32>
    %27 = arith.subf %24, %26 : vector<1x64x32xf32>
    %28 = arith.mulf %27, %27 : vector<1x64x32xf32>
    %cst_14 = arith.constant dense<0.000000e+00> : vector<1x32xf32>
    %29 = vector.multi_reduction <add>, %28, %cst_14 [1] : vector<1x64x32xf32> to vector<1x32xf32>
    %30 = arith.addf %20, %29 : vector<1x32xf32>
    %c1_i32_15 = arith.constant 1 : i32
    %cst_16 = arith.constant dense<0.000000e+00> : vector<1x32xf32>
    %31 = tpu.matmul %30, %0, %cst_16 {dimension_numbers = #tpu.dot_dimension_numbers<[1], [0], [0], [1], [0, 0, 1, 1], [], []>} : vector<1x32xf32>, vector<32x32xf32>, vector<1x32xf32> -> vector<1x32xf32>
    %cst_17 = arith.constant 6.400000e+01 : f32
    %32 = vector.broadcast %cst_17 : f32 to vector<1x32xf32>
    %33 = arith.divf %31, %32 : vector<1x32xf32>
    %cst_18 = arith.constant 9.99999997E-7 : f32
    %34 = vector.broadcast %cst_18 : f32 to vector<1x32xf32>
    %35 = arith.addf %33, %34 : vector<1x32xf32>
    %36 = math.rsqrt %35 : vector<1x32xf32>
    %cst_19 = arith.constant dense<0.000000e+00> : vector<1x32xf32>
    %37 = tpu.matmul %36, %0, %cst_19 {dimension_numbers = #tpu.dot_dimension_numbers<[1], [1], [0], [0], [0, 0, 1, 0], [], []>} : vector<1x32xf32>, vector<32x32xf32>, vector<1x32xf32> -> vector<1x32xf32>
    %38 = arith.mulf %37, %2 : vector<1x32xf32>
    %39 = vector.shape_cast %38 : vector<1x32xf32> to vector<1x1x32xf32>
    %40 = vector.shape_cast %19 : vector<1x32xf32> to vector<1x1x32xf32>
    %41 = vector.shape_cast %3 : vector<1x32xf32> to vector<1x1x32xf32>
    %c0_i32_20 = arith.constant 0 : i32
    %c1_i32_21 = arith.constant 1 : i32
    %42 = arith.muli %c0_i32_20, %c1_i32_21 : i32
    %c0_i32_22 = arith.constant 0 : i32
    %43 = arith.addi %c0_i32_22, %42 : i32
    %c64_i32_23 = arith.constant 64 : i32
    %44 = arith.muli %43, %c64_i32_23 : i32
    %45 = tpu.assume_multiple %44, 64 : i32
    %c0_24 = arith.constant 0 : index
    %46 = arith.index_cast %45 : i32 to index
    %c0_25 = arith.constant 0 : index
    %47 = vector.load %arg1[%c0_24, %46, %c0_25] : memref<1x64x32xf32, #tpu.memory_space<vmem>>, vector<1x64x32xf32>
    %48 = vector.broadcast %40 : vector<1x1x32xf32> to vector<1x64x32xf32>
    %49 = arith.subf %47, %48 : vector<1x64x32xf32>
    %50 = vector.broadcast %39 : vector<1x1x32xf32> to vector<1x64x32xf32>
    %51 = arith.mulf %49, %50 : vector<1x64x32xf32>
    %52 = vector.broadcast %41 : vector<1x1x32xf32> to vector<1x64x32xf32>
    %53 = arith.addf %51, %52 : vector<1x64x32xf32>
    %54 = arith.truncf %53 : vector<1x64x32xf32> to vector<1x64x32xbf16>
    %55 = vector.shape_cast %54 : vector<1x64x32xbf16> to vector<64x32xbf16>
    %c0_26 = arith.constant 0 : index
    %c0_27 = arith.constant 0 : index
    %56 = vector.load %arg4[%c0_26, %c0_27] : memref<32x96xbf16, #tpu.memory_space<vmem>>, vector<32x96xbf16>
    %cst_28 = arith.constant dense<0.000000e+00> : vector<64x96xf32>
    %57 = tpu.matmul %55, %56, %cst_28 {dimension_numbers = #tpu.dot_dimension_numbers<[1], [0], [0], [1], [0, 0, 1, 1], [], []>} : vector<64x32xbf16>, vector<32x96xbf16>, vector<64x96xf32> -> vector<64x96xf32>
    %58 = vector.broadcast %7 : vector<1x96xf32> to vector<64x96xf32>
    %59 = arith.addf %57, %58 : vector<64x96xf32>
    %60 = arith.truncf %59 : vector<64x96xf32> to vector<64x96xbf16>
    %61 = vector.shape_cast %60 : vector<64x96xbf16> to vector<1x64x96xbf16>
    %62 = vector.extract_strided_slice %61 {offsets = [0, 0, 0], sizes = [1, 64, 32], strides = [1, 1, 1]} : vector<1x64x96xbf16> to vector<1x64x32xbf16>
    %c0_29 = arith.constant 0 : index
    %63 = arith.index_cast %45 : i32 to index
    %c0_30 = arith.constant 0 : index
    %64 = vector.load %arg7[%c0_29, %63, %c0_30] : memref<1x64x32xbf16, #tpu.memory_space<vmem>>, vector<1x64x32xbf16>
    tpu.vector_store %arg7[%c0_29, %63, %c0_30], %62 {strides = array<i32>} : memref<1x64x32xbf16, #tpu.memory_space<vmem>>, vector<1x64x32xbf16>,
    %65 = vector.extract_strided_slice %61 {offsets = [0, 0, 32], sizes = [1, 64, 32], strides = [1, 1, 1]} : vector<1x64x96xbf16> to vector<1x64x32xbf16>
    %c0_31 = arith.constant 0 : index
    %66 = arith.index_cast %45 : i32 to index
    %c0_32 = arith.constant 0 : index
    %67 = vector.load %arg8[%c0_31, %66, %c0_32] : memref<1x64x32xbf16, #tpu.memory_space<vmem>>, vector<1x64x32xbf16>
    tpu.vector_store %arg8[%c0_31, %66, %c0_32], %65 {strides = array<i32>} : memref<1x64x32xbf16, #tpu.memory_space<vmem>>, vector<1x64x32xbf16>,
    %68 = vector.extract_strided_slice %61 {offsets = [0, 0, 64], sizes = [1, 64, 32], strides = [1, 1, 1]} : vector<1x64x96xbf16> to vector<1x64x32xbf16>
    %c0_33 = arith.constant 0 : index
    %69 = arith.index_cast %45 : i32 to index
    %c0_34 = arith.constant 0 : index
    %70 = vector.load %arg9[%c0_33, %69, %c0_34] : memref<1x64x32xbf16, #tpu.memory_space<vmem>>, vector<1x64x32xbf16>
    tpu.vector_store %arg9[%c0_33, %69, %c0_34], %68 {strides = array<i32>} : memref<1x64x32xbf16, #tpu.memory_space<vmem>>, vector<1x64x32xbf16>,
    %c1_i32_35 = arith.constant 1 : i32
    %c0_i32_36 = arith.constant 0 : i32
    %c1_i32_37 = arith.constant 1 : i32
    %71 = arith.muli %c0_i32_36, %c1_i32_37 : i32
    %c0_i32_38 = arith.constant 0 : i32
    %72 = arith.addi %c0_i32_38, %71 : i32
    %c64_i32_39 = arith.constant 64 : i32
    %73 = arith.muli %72, %c64_i32_39 : i32
    %74 = tpu.assume_multiple %73, 64 : i32
    %c0_40 = arith.constant 0 : index
    %75 = arith.index_cast %74 : i32 to index
    %c0_41 = arith.constant 0 : index
    %76 = vector.load %arg7[%c0_40, %75, %c0_41] : memref<1x64x32xbf16, #tpu.memory_space<vmem>>, vector<1x64x32xbf16>
    %c0_42 = arith.constant 0 : index
    %c0_43 = arith.constant 0 : index
    %c0_44 = arith.constant 0 : index
    %77 = vector.load %arg8[%c0_42, %c0_43, %c0_44] : memref<1x64x32xbf16, #tpu.memory_space<vmem>>, vector<1x64x32xbf16>
    %cst_45 = arith.constant dense<0.000000e+00> : vector<1x64x64xf32>
    %78 = tpu.matmul %76, %77, %cst_45 {dimension_numbers = #tpu.dot_dimension_numbers<[2], [2], [1], [1], [0, 0, 0, 1, 1, 1], [0], [0]>} : vector<1x64x32xbf16>, vector<1x64x32xbf16>, vector<1x64x64xf32> -> vector<1x64x64xf32>
    %cst_46 = arith.constant 0.176776692 : f32
    %79 = vector.broadcast %cst_46 : f32 to vector<1x64x64xf32>
    %80 = arith.mulf %78, %79 : vector<1x64x64xf32>
    %cst_47 = arith.constant dense<0xFF800000> : vector<1x64xf32>
    %81 = vector.multi_reduction <maximumf>, %80, %cst_47 [2] : vector<1x64x64xf32> to vector<1x64xf32>
    %82 = vector.shape_cast %81 : vector<1x64xf32> to vector<1x64x1xf32>
    %83 = vector.broadcast %82 : vector<1x64x1xf32> to vector<1x64x64xf32>
    %84 = arith.subf %80, %83 : vector<1x64x64xf32>
    %85 = math.exp %84 : vector<1x64x64xf32>
    %cst_48 = arith.constant dense<0.000000e+00> : vector<1x64xf32>
    %86 = vector.multi_reduction <add>, %85, %cst_48 [2] : vector<1x64x64xf32> to vector<1x64xf32>
    %87 = vector.shape_cast %86 : vector<1x64xf32> to vector<1x64x1xf32>
    %88 = arith.truncf %85 : vector<1x64x64xf32> to vector<1x64x64xbf16>
    %c0_49 = arith.constant 0 : index
    %c0_50 = arith.constant 0 : index
    %c0_51 = arith.constant 0 : index
    %89 = vector.load %arg9[%c0_49, %c0_50, %c0_51] : memref<1x64x32xbf16, #tpu.memory_space<vmem>>, vector<1x64x32xbf16>
    %cst_52 = arith.constant dense<0.000000e+00> : vector<1x64x32xf32>
    %90 = tpu.matmul %88, %89, %cst_52 {dimension_numbers = #tpu.dot_dimension_numbers<[2], [1], [1], [2], [0, 0, 0, 1, 1, 2], [0], [0]>} : vector<1x64x64xbf16>, vector<1x64x32xbf16>, vector<1x64x32xf32> -> vector<1x64x32xf32>
    %91 = tpu.reciprocal %87 {approx = true} : vector<1x64x1xf32> -> vector<1x64x1xf32>
    %92 = vector.broadcast %91 : vector<1x64x1xf32> to vector<1x64x32xf32>
    %93 = arith.mulf %90, %92 : vector<1x64x32xf32>
    %94 = vector.shape_cast %93 : vector<1x64x32xf32> to vector<64x32xf32>
    %95 = arith.truncf %94 : vector<64x32xf32> to vector<64x32xbf16>
    %c0_53 = arith.constant 0 : index
    %c0_54 = arith.constant 0 : index
    %96 = vector.load %arg5[%c0_53, %c0_54] : memref<32x32xbf16, #tpu.memory_space<vmem>>, vector<32x32xbf16>
    %cst_55 = arith.constant dense<0.000000e+00> : vector<64x32xf32>
    %97 = tpu.matmul %95, %96, %cst_55 {dimension_numbers = #tpu.dot_dimension_numbers<[1], [0], [0], [1], [0, 0, 1, 1], [], []>} : vector<64x32xbf16>, vector<32x32xbf16>, vector<64x32xf32> -> vector<64x32xf32>
    %98 = vector.broadcast %8 : vector<1x32xf32> to vector<64x32xf32>
    %99 = arith.addf %97, %98 : vector<64x32xf32>
    %c0_56 = arith.constant 0 : index
    %100 = arith.index_cast %74 : i32 to index
    %c0_57 = arith.constant 0 : index
    %101 = vector.load %arg1[%c0_56, %100, %c0_57] : memref<1x64x32xf32, #tpu.memory_space<vmem>>, vector<1x64x32xf32>
    %102 = vector.shape_cast %99 : vector<64x32xf32> to vector<1x64x32xf32>
    %103 = arith.addf %101, %102 : vector<1x64x32xf32>
    %c0_58 = arith.constant 0 : index
    %104 = arith.index_cast %74 : i32 to index
    %c0_59 = arith.constant 0 : index
    %105 = vector.load %arg6[%c0_58, %104, %c0_59] : memref<1x64x32xf32, #tpu.memory_space<vmem>>, vector<1x64x32xf32>
    tpu.vector_store %arg6[%c0_58, %104, %c0_59], %103 {strides = array<i32>} : memref<1x64x32xf32, #tpu.memory_space<vmem>>, vector<1x64x32xf32>,
    %c1_i32_60 = arith.constant 1 : i32
    return
  }
  func.func @transform_0(%arg0: i32) -> (i32, i32, i32) {
    %c0_i32 = arith.constant 0 : i32
    %c0_i32_0 = arith.constant 0 : i32
    %c0_i32_1 = arith.constant 0 : i32
    return %arg0, %c0_i32, %c0_i32_0 : i32, i32, i32
  }
  func.func @transform_1(%arg0: i32) -> (i32, i32) {
    %c0_i32 = arith.constant 0 : i32
    %c0_i32_0 = arith.constant 0 : i32
    %c0_i32_1 = arith.constant 0 : i32
    return %c0_i32, %c0_i32_0 : i32, i32
  }
  func.func @transform_2(%arg0: i32) -> (i32, i32) {
    %c0_i32 = arith.constant 0 : i32
    %c0_i32_0 = arith.constant 0 : i32
    %c0_i32_1 = arith.constant 0 : i32
    return %c0_i32, %c0_i32_0 : i32, i32
  }
  func.func @transform_3(%arg0: i32) -> (i32, i32) {
    %c0_i32 = arith.constant 0 : i32
    %c0_i32_0 = arith.constant 0 : i32
    %c0_i32_1 = arith.constant 0 : i32
    return %c0_i32, %c0_i32_0 : i32, i32
  }
  func.func @transform_4(%arg0: i32) -> (i32, i32) {
    %c0_i32 = arith.constant 0 : i32
    %c0_i32_0 = arith.constant 0 : i32
    %c0_i32_1 = arith.constant 0 : i32
    return %c0_i32, %c0_i32_0 : i32, i32
  }
  func.func @transform_5(%arg0: i32) -> (i32, i32, i32) {
    %c0_i32 = arith.constant 0 : i32
    %c0_i32_0 = arith.constant 0 : i32
    %c0_i32_1 = arith.constant 0 : i32
    return %arg0, %c0_i32, %c0_i32_0 : i32, i32, i32
  }
}

</mosaic_0001>

<bundles_post_ra>
// kernel: tpu_custom_call.1
= control target key start
LH: loop header
LB: loop body
LE: loop exit
PB: predicated region body
PF: predicated region fallthrough
CT: control target
= control target key end

     0   :  { %s1721_s18 = smov 0   ;;  %s2039_s0 = inlined_call_operand.vmem [shape: f32[4,64,32], index: 0, kind: input, shape index: {}]   ;;  %s2040_s1 = inlined_call_operand.vmem [shape: f32[32,32], index: 1, kind: input, shape index: {}]   ;;  %s2041_s2 = inlined_call_operand.vmem [shape: f32[8,32], index: 2, kind: input, shape index: {}]   ;;  %s2042_s3 = inlined_call_operand.vmem [shape: bf16[32,96], index: 3, kind: input, shape index: {}]   ;;  %s2043_s4 = inlined_call_operand.vmem [shape: bf16[32,32], index: 4, kind: input, shape index: {}]   ;;  %s2044_s5 = inlined_call_operand.vmem [shape: f32[4,64,32], index: 5, kind: output, shape index: {}]  }
   0x1 LB: > { %s1390_s19 = sadd.s32 4294967295, %s1684_s18   ;;  %p1394_p0 = scmp.ge.s32.totalorder %s1684_s18, 1  ;;  %s1684_s18 = sphi %s1721_s18, %s15_s18  }
   0x2   : > { %p187_p1 = scmp.lt.s32.totalorder %s1684_s18, 5 }
   0x4   : > { %p188_p2 = pnand %p1394_p0, %p187_p1 }
   0x5   : > { %p215_p3 = scmp.lt.s32.totalorder (!%p188_p2), %s1390_s19, 3  ;;  %s1688_s13 = smov (!%p188_p2), 32  }
   0x6   : > { %191 = sbr.rel (%p188_p2) target bundleno = 2024 (0x7e8), region = 40  ;;  %s1689_s14 = smov (!%p188_p2), 64  }
   0x7   : > { %s1690_s15 = smov (!%p188_p2), 96  }
   0xb   : > { %v1732_v0 = vld [vmem:[%s2040_s1 + $0x18] sm:$0xff]  ;;  %v1737_v1 = vld [vmem:[%s2040_s1 + $0x10] sm:$0xff]  ;;  %v1686_v2 = vmov 0.0   ;;  %v1743_v3 = vld [vmem:[%s2040_s1 + $0x8] sm:$0xff]  ;;  %vm1687_vm0 = vmmov 0   ;;  %s2046_s19 = smov (!%p215_p3, %s1390_s19), 3  ;;  %v434_v37 = vlaneseq }
   0xc   : > { %1511 = vmatprep.subr.mxu0 %v1686_v2  ;;  %1519 = vmatprep.mubr.msk.f32.mxu0 %vm1687_vm0, %v1686_v2  ;;  %vm240_vm1 = vcmask 261120   ;;  %s1453_s26 = sshll.u32 %s2046_s19, 6  ;;  %v1761_v4 = vld [vmem:[%s2040_s1] sm:$0xff]  ;;  %vm242_vm2 = vcmask 523264   ;;  %vm783_vm3 = vcmask 257024  }
   0xd   : > { %1512 = vmatpush3.msra.mxu0 %v1732_v0  ;;  %1522 = vmatprep.subr.mxu1 %v1686_v2  ;;  %s219_s6 = scalar_lea.vmem %s2039_s0, %s1453_s26  ;;  %v1826_v38 = vshrl.u32 %v434_v37, 7  ;;  %s224_s24 = scalar_lea.vmem %s2044_s5, %s1453_s26 }
   0xe   : > { %1513 = vmatprep.subr.mxu0 %v1686_v2  ;;  %1523 = vmatpush3.xpose.msk.msra.mxu1 %vm240_vm1, %v1732_v0  ;;  %v1771_v5 = vld [vmem:[%s219_s6] sm:$0xff]  ;;  %v1773_v6 = vld [vmem:[%s219_s6 + $0x8] sm:$0xff]  ;;  %v1775_v7 = vld [vmem:[%s219_s6 + $0x10] sm:$0xff] }
   0xf   : > { %1514 = vmatpush3.msra.mxu0 %v1737_v1  ;;  %1524 = vmatprep.subr.mxu1 %v1686_v2  ;;  %v1778_v8 = vld [vmem:[%s219_s6 + $0x18] sm:$0xff]  ;;  %v252_v9 = vsel %vm240_vm1, %v1771_v5, 0.0  ;;  %v253_v10 = vsel %vm240_vm1, %v1773_v6, 0.0  ;;  %v255_v11 = vsel %vm240_vm1, %v1775_v7, 0.0  ;;  %v1789_v12 = vld [vmem:[%s219_s6 + $0x20] sm:$0xff]  ;;  %v1795_v15 = vld [vmem:[%s219_s6 + $0x28] sm:$0xff] }
  0x10   : > { %1515 = vmatprep.subr.mxu0 %v1686_v2  ;;  %1530 = vmatprep.mubr.msk.f32.mxu1 %vm1687_vm0, %v1686_v2  ;;  %v254_v13 = vadd.f32 %v253_v10, %v252_v9  ;;  %v257_v14 = vsel %vm240_vm1, %v1778_v8, 0.0  ;;  %v259_v17 = vsel %vm240_vm1, %v1789_v12, 0.0  ;;  %v1801_v18 = vld [vmem:[%s219_s6 + $0x30] sm:$0xff]  ;;  %v261_v20 = vsel %vm240_vm1, %v1795_v15, 0.0  ;;  %v1806_v21 = vld [vmem:[%s219_s6 + $0x38] sm:$0xff] }
  0x11   : > { %1516 = vmatpush3.msra.mxu0 %v1743_v3  ;;  %v263_v23 = vsel %vm240_vm1, %v1801_v18, 0.0  ;;  %v265_v25 = vsel %vm240_vm1, %v1806_v21, 0.0  ;;  %v436_v39 = vsub.s32 0, %v1826_v38 }
  0x12   : > { %1517 = vmatprep.subr.mxu0 %v1686_v2  ;;  %1525 = vmatpush3.xpose.msk.msra.mxu1 %vm240_vm1, %v1737_v1  ;;  %v256_v16 = vadd.f32 %v255_v11, %v254_v13 }
  0x13   : > { %1518 = vmatpush3.msra.mxu0 %v1761_v4  ;;  %1526 = vmatprep.subr.mxu1 %v1686_v2 }
  0x14   : > { %1533 = vmatprep.subr.mxu0 %v1686_v2  ;;  %v258_v19 = vadd.f32 %v257_v14, %v256_v16 }
  0x16   : > { %1527 = vmatpush3.xpose.msk.msra.mxu1 %vm240_vm1, %v1743_v3  ;;  %v260_v22 = vadd.f32 %v259_v17, %v258_v19 }
  0x17   : > { %1528 = vmatprep.subr.mxu1 %v1686_v2 }
  0x18   : > { %v262_v24 = vadd.f32 %v261_v20, %v260_v22 }
  0x1a   : > { %1529 = vmatpush3.xpose.msk.msra.mxu1 %vm240_vm1, %v1761_v4  ;;  %v264_v26 = vadd.f32 %v263_v23, %v262_v24 }
  0x1c   : > { %v266_v27 = vadd.f32 %v265_v25, %v264_v26 }
  0x1e   : > { %v267_v28 = vrot.slane %v266_v27, 4 }
  0x20   : > { %v268_v29 = vadd.f32 %v267_v28, %v266_v27 }
  0x22   : > { %v269_v30 = vrot.slane %v268_v29, 2 }
  0x24   : > { %v270_v31 = vadd.f32 %v269_v30, %v268_v29 }
  0x26   : > { %v271_v32 = vrot.slane %v270_v31, 1 }
  0x28   : > { %v272_v33 = vadd.f32 %v271_v32, %v270_v31 }
  0x2a   : > { %1520 = vmatmul.mubr.msk.f32.vlgmr.msra.gmra.mxu0 %vm240_vm1, %v272_v33 }
  0x2b   : > { %1534 = vmatpush3.msra.mxu0 %v1732_v0  ;;  %1541 = vmatprep.mubr.msk.f32.mxu0 %vm1687_vm0, %v1686_v2 }
  0x2c   : > { %1535 = vmatprep.subr.mxu0 %v1686_v2 }
  0x2d   : > { %1536 = vmatpush3.msra.mxu0 %v1737_v1 }
  0x2e   : > { %1537 = vmatprep.subr.mxu0 %v1686_v2 }
  0x2f   : > { %1538 = vmatpush3.msra.mxu0 %v1743_v3 }
  0x30   : > { %1539 = vmatprep.subr.mxu0 %v1686_v2 }
  0x31   : > { %1540 = vmatpush3.msra.mxu0 %v1761_v4 }
  0x32   : > { %1544 = vmatprep.subr.mxu0 %v1686_v2 }
  0xea   : > { %v343_v34 = vpop.f32.mrf.mxu0 }
  0xeb   : > { %v348_v35 = vmul.f32 0.015625, %v343_v34  ;;  %v640_v34 = vsub.s32 1, %v1826_v38 }
  0xec   : > { %v1521_v36 = vpop.f32.mrf.mxu0 }
  0xed   : > { %1531 = vmatmul.mubr.msk.f32.vlgmr.msra.gmra.mxu1 %vm240_vm1, %v348_v35 }
 0x1ad   : > { %v430_v40 = vpop.f32.mrf.mxu1 }
 0x1ae   : > { %v437_v41 = vrot.slane %v430_v40, %v436_v39 }
 0x1af   : > { %v1532_v42 = vpop.f32.mrf.mxu1 }
 0x1b0   : > { %v1832_v43 = vsub.f32 %v1771_v5, %v437_v41  ;;  %v1835_v44 = vsub.f32 %v1773_v6, %v437_v41  ;;  %v1838_v45 = vsub.f32 %v1775_v7, %v437_v41  ;;  %v1841_v46 = vsub.f32 %v1778_v8, %v437_v41 }
 0x1b1   : > { %v1844_v47 = vsub.f32 %v1789_v12, %v437_v41  ;;  %v1853_v51 = vsub.f32 %v1795_v15, %v437_v41  ;;  %v1860_v56 = vsub.f32 %v1801_v18, %v437_v41  ;;  %v1866_v60 = vsub.f32 %v1806_v21, %v437_v41 }
 0x1b2   : > { %v446_v48 = vmul.f32 %v1832_v43, %v1832_v43  ;;  %v447_v49 = vmul.f32 %v1835_v44, %v1835_v44  ;;  %v448_v50 = vmul.f32 %v1838_v45, %v1838_v45  ;;  %v449_v52 = vmul.f32 %v1841_v46, %v1841_v46 }
 0x1b3   : > { %v450_v57 = vmul.f32 %v1844_v47, %v1844_v47  ;;  %v451_v61 = vmul.f32 %v1853_v51, %v1853_v51  ;;  %v452_v9 = vmul.f32 %v1860_v56, %v1860_v56  ;;  %v453_v13 = vmul.f32 %v1866_v60, %v1866_v60 }
 0x1b4   : > { %v454_v53 = vsel %vm240_vm1, %v446_v48, 0.0  ;;  %v455_v54 = vsel %vm240_vm1, %v447_v49, 0.0  ;;  %v457_v58 = vsel %vm240_vm1, %v448_v50, 0.0  ;;  %v459_v62 = vsel %vm240_vm1, %v449_v52, 0.0 }
 0x1b5   : > { %v456_v55 = vadd.f32 %v455_v54, %v454_v53  ;;  %v461_v10 = vsel %vm240_vm1, %v450_v57, 0.0  ;;  %v463_v14 = vsel %vm240_vm1, %v451_v61, 0.0  ;;  %v465_v17 = vsel %vm240_vm1, %v452_v9, 0.0 }
 0x1b6   : > { %v467_v20 = vsel %vm240_vm1, %v453_v13, 0.0 }
 0x1b7   : > { %v458_v59 = vadd.f32 %v457_v58, %v456_v55 }
 0x1b9   : > { %v460_v63 = vadd.f32 %v459_v62, %v458_v59 }
 0x1bb   : > { %v462_v11 = vadd.f32 %v461_v10, %v460_v63 }
 0x1bd   : > { %v464_v16 = vadd.f32 %v463_v14, %v462_v11 }
 0x1bf   : > { %v466_v19 = vadd.f32 %v465_v17, %v464_v16 }
 0x1c1   : > { %v468_v22 = vadd.f32 %v467_v20, %v466_v19 }
 0x1c3   : > { %v469_v23 = vrot.slane %v468_v22, 4 }
 0x1c5   : > { %v470_v24 = vadd.f32 %v469_v23, %v468_v22 }
 0x1c7   : > { %v471_v25 = vrot.slane %v470_v24, 2 }
 0x1c9   : > { %v472_v26 = vadd.f32 %v471_v25, %v470_v24 }
 0x1cb   : > { %v473_v27 = vrot.slane %v472_v26, 1 }
 0x1cd   : > { %v474_v28 = vadd.f32 %v473_v27, %v472_v26 }
 0x1cf   : > { %1542 = vmatmul.mubr.msk.f32.vlgmr.msra.gmra.mxu0 %vm240_vm1, %v474_v28 }
 0x1d0   : > { %1545 = vmatpush3.xpose.msk.msra.mxu0 %vm240_vm1, %v1732_v0  ;;  %1552 = vmatprep.mubr.msk.f32.mxu0 %vm1687_vm0, %v1686_v2 }
 0x1d1   : > { %1546 = vmatprep.subr.mxu0 %v1686_v2 }
 0x1d4   : > { %1547 = vmatpush3.xpose.msk.msra.mxu0 %vm240_vm1, %v1737_v1  ;;  %v1628_v1 = vld [vmem:[%s2042_s3 + $0x8] sm:$0xff]  }
 0x1d5   : > { %1548 = vmatprep.subr.mxu0 %v1686_v2  ;;  %1555 = vmatprep.subr.bf16.mxu1 %v1628_v1 }
 0x1d6   : > { %1556 = vmatpush3.bf16.msra.mxu1 %v1628_v1 }
 0x1d8   : > { %1549 = vmatpush3.xpose.msk.msra.mxu0 %vm240_vm1, %v1743_v3  ;;  %v1629_v3 = vld [vmem:[%s2042_s3] sm:$0xff]  }
 0x1d9   : > { %1550 = vmatprep.subr.mxu0 %v1686_v2  ;;  %1557 = vmatprep.subr.bf16.mxu1 %v1629_v3  ;;  %v1903_v2 = vld [vmem:[%s2041_s2] sm:$0xff] }
 0x1da   : > { %1558 = vmatpush3.bf16.msra.mxu1 %v1629_v3  ;;  %v236_v33 = vrot.slane %v1903_v2, 2  ;;  %v641_v41 = vrot.slane %v1903_v2, %v640_v34 }
 0x1dc   : > { %1551 = vmatpush3.xpose.msk.msra.mxu0 %vm240_vm1, %v1761_v4  ;;  %v232_v4 = vrot.slane %v1903_v2, 1 }
 0x1de   : > { %233 = vrot.lane.b32.xlu0 %v232_v4, %s1688_s13 }
 0x1e2   : > { %237 = vrot.lane.b32.xlu0 %v236_v33, %s1689_s14 }
 0x250   : > { %v234_v63 = vpop.permute.xlu0 %233 }
 0x251   : > { %v241_v9 = vsel %vm240_vm1, %v1903_v2, %v234_v63 }
 0x28f   : > { %v545_v29 = vpop.f32.mrf.mxu0 }
 0x290   : > { %v549_v0 = vmul.f32 0.015625, %v545_v29 }
 0x291   : > { %v1543_v30 = vpop.f32.mrf.mxu0 }
 0x292   : > { %v550_v31 = vadd.f32 1e-06, %v549_v0 }
 0x294   : > { %1644 = vrsqrt.f32 %v550_v31 }
 0x2a1   : > { %v1645_v32 = vpop.eup %1644 }
 0x2a2   : > { %1553 = vmatmul.mubr.msk.f32.vlgmr.msra.gmra.mxu0 %vm240_vm1, %v1645_v32 }
 0x362   : > { %v621_v35 = vpop.f32.mrf.mxu0 }
 0x363   : > { %v625_v36 = vmul.f32 %v621_v35, %v1903_v2 }
 0x364   : > { %v1554_v37 = vpop.f32.mrf.mxu0 }
 0x365   : > { %v629_v40 = vrot.slane %v625_v36, %v436_v39 }
 0x367   : > { %v630_v42 = vmul.f32 %v629_v40, %v1832_v43  ;;  %v631_v48 = vmul.f32 %v629_v40, %v1835_v44  ;;  %v632_v49 = vmul.f32 %v629_v40, %v1838_v45  ;;  %v633_v50 = vmul.f32 %v629_v40, %v1841_v46 }
 0x368   : > { %v634_v52 = vmul.f32 %v629_v40, %v1844_v47  ;;  %v635_v53 = vmul.f32 %v629_v40, %v1853_v51  ;;  %v636_v43 = vmul.f32 %v629_v40, %v1860_v56  ;;  %v637_v44 = vmul.f32 %v629_v40, %v1866_v60  ;;  %v238_v56 = vpop.permute.xlu0 %237 }
 0x369   : > { %v642_v54 = vadd.f32 %v641_v41, %v630_v42  ;;  %v643_v55 = vadd.f32 %v641_v41, %v631_v48  ;;  %v644_v57 = vadd.f32 %v641_v41, %v632_v49  ;;  %v645_v58 = vadd.f32 %v641_v41, %v633_v50 }
 0x36a   : > { %v646_v59 = vadd.f32 %v641_v41, %v634_v52  ;;  %v647_v39 = vadd.f32 %v641_v41, %v635_v53  ;;  %v648_v46 = vadd.f32 %v641_v41, %v636_v43  ;;  %v649_v47 = vadd.f32 %v641_v41, %v637_v44 }
 0x36b   : > { %v650_v61 = vpack.c.bf16 %v643_v55, %v642_v54  ;;  %v651_v62 = vpack.c.bf16 %v645_v58, %v644_v57  ;;  %v660_v60 = vsub.s32 2, %v1826_v38  ;;  %v243_v10 = vsel %vm242_vm2, %v241_v9, %v238_v56 }
 0x36c   : > { %v652_v45 = vpack.c.bf16 %v647_v39, %v646_v59  ;;  %v653_v51 = vpack.c.bf16 %v649_v47, %v648_v46 }
 0x36d   : > { %1559 = vmatprep.mubr.msk.bf16.mxu1 %vm240_vm1, %v650_v61  ;;  %v661_v11 = vrot.slane %v243_v10, %v660_v60 }
 0x36e   : > { %1560 = vmatmul.mubr.msk.bf16.vlgmr.msra.gmra.mxu1 %vm240_vm1, %v651_v62 }
 0x36f   : > { %1563 = vmatprep.mubr.msk.bf16.mxu1 %vm240_vm1, %v652_v45 }
 0x376   : > { %1564 = vmatmul.mubr.msk.bf16.gmra.mxu1 %vm240_vm1, %v653_v51 }
 0x42e   : > { %v1561_v13 = vpop.f32.mrf.mxu1 }
 0x42f   : > { %v729_v14 = vadd.f32 %v1561_v13, %v661_v11 }
 0x430   : > { %v720_v16 = vpop.f32.mrf.mxu1 }
 0x431   : > { %v1457_v17 = vpack.c.bf16 %v729_v14, %v729_v14  ;;  %v721_v19 = vadd.f32 %v720_v16, %v661_v11 }
 0x432   : > { %v1562_v20 = vpop.f32.mrf.mxu1 }
 0x433   : > { %786 = vst.msk [vmem:[#allocation2 + $0x8] sm:$0xf] %vm783_vm3, %v1457_v17  ;;  %v1930_v22 = vpack.c.bf16 %v721_v19, %v721_v19  ;;  %v732_v23 = vadd.f32 %v1562_v20, %v661_v11 }
 0x434   : > { %v723_v24 = vpop.f32.mrf.mxu1 }
 0x435   : > { %784 = vst.msk [vmem:[#allocation2] sm:$0xf] %vm783_vm3, %v1930_v22  ;;  %v1458_v25 = vpack.c.bf16 %v732_v23, %v732_v23  ;;  %v724_v26 = vadd.f32 %v723_v24, %v661_v11 }
 0x436   : > { %v1565_v27 = vpop.f32.mrf.mxu1 }
 0x437   : > { %787 = vst.msk [vmem:[#allocation2 + $0xc] sm:$0xf] %vm783_vm3, %v1458_v25  ;;  %v1935_v28 = vpack.c.bf16 %v724_v26, %v724_v26  ;;  %v745_v29 = vadd.f32 %v1565_v27, %v661_v11 }
 0x438   : > { %v736_v0 = vpop.f32.mrf.mxu1 }
 0x439   : > { %785 = vst.msk [vmem:[#allocation2 + $0x4] sm:$0xf] %vm783_vm3, %v1935_v28  ;;  %v1461_v30 = vpack.c.bf16 %v745_v29, %v745_v29  ;;  %v737_v31 = vadd.f32 %v736_v0, %v661_v11 }
 0x43a   : > { %v1566_v32 = vpop.f32.mrf.mxu1 }
 0x43b   : > { %790 = vst.msk [vmem:[#allocation2 + $0x18] sm:$0xf] %vm783_vm3, %v1461_v30  ;;  %v1459_v1 = vpack.c.bf16 %v737_v31, %v737_v31  ;;  %v748_v3 = vadd.f32 %v1566_v32, %v661_v11  ;;  %804 = vrot.lane.b32.xlu1 %v1461_v30, %s1690_s15 }
 0x43c   : > { %v739_v4 = vpop.f32.mrf.mxu1 }
 0x43d   : > { %788 = vst.msk [vmem:[#allocation2 + $0x10] sm:$0xf] %vm783_vm3, %v1459_v1  ;;  %v1462_v33 = vpack.c.bf16 %v748_v3, %v748_v3  ;;  %v740_v34 = vadd.f32 %v739_v4, %v661_v11  ;;  %800 = vrot.lane.b32.xlu0 %v1459_v1, %s1690_s15 }
 0x43e   : > { %v1638_v56 = vld [vmem:[#allocation2 + $0x8] sm:$0xff]  }
 0x43f   : > { %791 = vst.msk [vmem:[#allocation2 + $0x1c] sm:$0xf] %vm783_vm3, %v1462_v33  ;;  %v1460_v35 = vpack.c.bf16 %v740_v34, %v740_v34  ;;  %806 = vrot.lane.b32.xlu1 %v1462_v33, %s1690_s15 }
 0x440   : > { %v1630_v36 = vld [vmem:[#allocation2] sm:$0xff]  }
 0x441   : > { %789 = vst.msk [vmem:[#allocation2 + $0x14] sm:$0xf] %vm783_vm3, %v1460_v35  ;;  %796 = vrot.lane.b32.xlu0 %v1457_v17, %s1690_s15  ;;  %1575 = vmatprep.mubr.msk.bf16.mxu1 %vm240_vm1, %v1630_v36 }
 0x443   : > { %802 = vrot.lane.b32.xlu1 %v1460_v35, %s1690_s15 }
 0x445   : > { %792 = vrot.lane.b32.xlu0 %v1930_v22, %s1690_s15 }
 0x446   : > { %v1640_v10 = vld [vmem:[#allocation2 + $0x18] sm:$0xff]  }
 0x447   : > { %798 = vrot.lane.b32.xlu1 %v1458_v25, %s1690_s15 }
 0x448   : > { %v1639_v60 = vld [vmem:[#allocation2 + $0x10] sm:$0xff]  }
 0x449   : > { %838 = vrot.lane.b32.xlu0 %v1462_v33, %s1689_s14 }
 0x44b   : > { %794 = vrot.lane.b32.xlu1 %v1935_v28, %s1690_s15 }
 0x44d   : > { %834 = vrot.lane.b32.xlu0 %v1460_v35, %s1689_s14 }
 0x44f   : > { %836 = vrot.lane.b32.xlu1 %v1461_v30, %s1689_s14 }
 0x453   : > { %832 = vrot.lane.b32.xlu1 %v1459_v1, %s1689_s14 }
 0x457   : > { %828 = vrot.lane.b32.xlu1 %v1457_v17, %s1689_s14 }
 0x45b   : > { %830 = vrot.lane.b32.xlu1 %v1458_v25, %s1689_s14 }
 0x4ad   : > { %v805_v37 = vpop.permute.xlu1 %804 }
 0x4ae   : > { %822 = vst.msk [vmem:[#allocation3 + $0x18] sm:$0xf] %vm783_vm3, %v805_v37 }
 0x4af   : > { %v801_v40 = vpop.permute.xlu0 %800 }
 0x4b0   : > { %820 = vst.msk [vmem:[#allocation3 + $0x10] sm:$0xf] %vm783_vm3, %v801_v40 }
 0x4b1   : > { %v807_v41 = vpop.permute.xlu1 %806 }
 0x4b2   : > { %823 = vst.msk [vmem:[#allocation3 + $0x1c] sm:$0xf] %vm783_vm3, %v807_v41 }
 0x4b3   : > { %v797_v42 = vpop.permute.xlu0 %796 }
 0x4b4   : > { %818 = vst.msk [vmem:[#allocation3 + $0x8] sm:$0xf] %vm783_vm3, %v797_v42 }
 0x4b5   : > { %v803_v48 = vpop.permute.xlu1 %802 }
 0x4b6   : > { %821 = vst.msk [vmem:[#allocation3 + $0x14] sm:$0xf] %vm783_vm3, %v803_v48 }
 0x4b7   : > { %v793_v49 = vpop.permute.xlu0 %792 }
 0x4b8   : > { %816 = vst.msk [vmem:[#allocation3] sm:$0xf] %vm783_vm3, %v793_v49 }
 0x4b9   : > { %v799_v50 = vpop.permute.xlu1 %798  ;;  %v1631_v52 = vld [vmem:[#allocation3 + $0x18] sm:$0xff]  }
 0x4ba   : > { %819 = vst.msk [vmem:[#allocation3 + $0xc] sm:$0xf] %vm783_vm3, %v799_v50  ;;  %1611 = vmatprep.subr.msk.bf16.mxu1 %vm240_vm1, %v1631_v52  ;;  %v934_v54 = vsel %vm240_vm1, %v1631_v52, 0 }
 0x4bb   : > { %v839_v53 = vpop.permute.xlu0 %838  ;;  %1568 = vmatpush3.bf16.xpose.msra.mxu1 %v934_v54 }
 0x4bc   : > { %855 = vst.msk [vmem:[#allocation4 + $0x1c] sm:$0xf] %vm783_vm3, %v839_v53 }
 0x4bd   : > { %v795_v55 = vpop.permute.xlu1 %794  ;;  %v1632_v57 = vld [vmem:[#allocation3 + $0x10] sm:$0xff]  }
 0x4be   : > { %817 = vst.msk [vmem:[#allocation3 + $0x4] sm:$0xf] %vm783_vm3, %v795_v55  ;;  %1612 = vmatprep.subr.msk.bf16.mxu1 %vm240_vm1, %v1632_v57  ;;  %v931_v39 = vsel %vm240_vm1, %v1632_v57, 0 }
 0x4bf   : > { %v835_v58 = vpop.permute.xlu0 %834 }
 0x4c0   : > { %853 = vst.msk [vmem:[#allocation4 + $0x14] sm:$0xf] %vm783_vm3, %v835_v58 }
 0x4c1   : > { %v837_v59 = vpop.permute.xlu1 %836  ;;  %v1633_v61 = vld [vmem:[#allocation3 + $0x8] sm:$0xff]  }
 0x4c2   : > { %854 = vst.msk [vmem:[#allocation4 + $0x18] sm:$0xf] %vm783_vm3, %v837_v59  ;;  %v928_v45 = vsel %vm240_vm1, %v1633_v61, 0 }
 0x4c3   : > { %1570 = vmatpush3.bf16.xpose.msra.mxu1 %v931_v39 }
 0x4c4   : > { %1613 = vmatprep.subr.msk.bf16.mxu1 %vm240_vm1, %v1633_v61 }
 0x4c5   : > { %v833_v62 = vpop.permute.xlu1 %832  ;;  %v1635_v46 = vld [vmem:[#allocation3] sm:$0xff]  }
 0x4c6   : > { %852 = vst.msk [vmem:[#allocation4 + $0x10] sm:$0xf] %vm783_vm3, %v833_v62  ;;  %v925_v63 = vsel %vm240_vm1, %v1635_v46, 0 }
 0x4c9   : > { %v829_v43 = vpop.permute.xlu1 %828  ;;  %v1634_v44 = vld [vmem:[#allocation4 + $0x18] sm:$0xff]  }
 0x4ca   : > { %850 = vst.msk [vmem:[#allocation4 + $0x8] sm:$0xf] %vm783_vm3, %v829_v43  ;;  %1583 = vmatprep.subr.bf16.mxu0 %v1634_v44 }
 0x4cb   : > { %1572 = vmatpush3.bf16.xpose.msra.mxu1 %v928_v45  ;;  %1584 = vmatpush3.bf16.msra.mxu0 %v1634_v44 }
 0x4cc   : > { %1614 = vmatprep.subr.msk.bf16.mxu1 %vm240_vm1, %v1635_v46 }
 0x4cd   : > { %v831_v47 = vpop.permute.xlu1 %830  ;;  %v1636_v51 = vld [vmem:[#allocation4 + $0x10] sm:$0xff]  }
 0x4ce   : > { %851 = vst.msk [vmem:[#allocation4 + $0xc] sm:$0xf] %vm783_vm3, %v831_v47  ;;  %1585 = vmatprep.subr.bf16.mxu0 %v1636_v51 }
 0x4cf   : > { %1586 = vmatpush3.bf16.msra.mxu0 %v1636_v51 }
 0x4d3   : > { %1574 = vmatpush3.bf16.xpose.msra.mxu1 %v925_v63 }
 0x4d5   : > { %v1637_v9 = vld [vmem:[#allocation4 + $0x8] sm:$0xff]  }
 0x4d6   : > { %1587 = vmatprep.subr.bf16.mxu0 %v1637_v9 }
 0x4d7   : > { %1588 = vmatpush3.bf16.msra.mxu0 %v1637_v9 }
 0x4da   : > { %1576 = vmatmul.mubr.msk.bf16.vlgmr.msra.gmra.mxu1 %vm240_vm1, %v1638_v56 }
 0x4db   : > { %1579 = vmatprep.mubr.msk.bf16.mxu1 %vm240_vm1, %v1639_v60 }
 0x4e2   : > { %1580 = vmatmul.mubr.msk.bf16.gmra.mxu1 %vm240_vm1, %v1640_v10 }
 0x59a   : > { %v1577_v11 = vpop.f32.mrf.mxu1 }
 0x59b   : > { %v1003_v13 = vmul.f32 0.17677669, %v1577_v11 }
 0x59c   : > { %v970_v14 = vpop.f32.mrf.mxu1 }
 0x59d   : > { %v1001_v16 = vmul.f32 0.17677669, %v970_v14  ;;  %v1015_v17 = vsel %vm242_vm2, %v1003_v13, -inf }
 0x59e   : > { %1016 = vmax.xlane.f32.xlu0 %v1015_v17  ;;  %v1578_v19 = vpop.f32.mrf.mxu1 }
 0x59f   : > { %v1004_v23 = vmul.f32 0.17677669, %v1578_v19  ;;  %v1009_v25 = vsel %vm242_vm2, %v1001_v16, -inf }
 0x5a0   : > { %v973_v20 = vpop.f32.mrf.mxu1 }
 0x5a1   : > { %v1002_v24 = vmul.f32 0.17677669, %v973_v20  ;;  %v1018_v30 = vsel %vm242_vm2, %v1004_v23, -inf }
 0x5a2   : > { %1010 = vmax.xlane.f32.xlu0 %v1009_v25  ;;  %v1581_v26 = vpop.f32.mrf.mxu1 }
 0x5a3   : > { %v1007_v27 = vmul.f32 0.17677669, %v1581_v26  ;;  %v1012_v29 = vsel %vm242_vm2, %v1002_v24, -inf }
 0x5a4   : > { %1013 = vmax.xlane.f32.xlu1 %v1012_v29  ;;  %v986_v0 = vpop.f32.mrf.mxu1 }
 0x5a5   : > { %v1005_v32 = vmul.f32 0.17677669, %v986_v0  ;;  %v1027_v3 = vsel %vm242_vm2, %v1007_v27, -inf }
 0x5a6   : > { %1019 = vmax.xlane.f32.xlu0 %v1018_v30  ;;  %v1582_v31 = vpop.f32.mrf.mxu1 }
 0x5a7   : > { %v1008_v1 = vmul.f32 0.17677669, %v1582_v31  ;;  %v1021_v35 = vsel %vm242_vm2, %v1005_v32, -inf }
 0x5a8   : > { %1028 = vmax.xlane.f32.xlu1 %v1027_v3  ;;  %v989_v4 = vpop.f32.mrf.mxu1  ;;  %v1643_v3 = vld [vmem:[%s2043_s4] sm:$0xff]  }
 0x5a9   : > { %v1006_v33 = vmul.f32 0.17677669, %v989_v4  ;;  %v1030_v34 = vsel %vm242_vm2, %v1008_v1, -inf }
 0x5aa   : > { %1031 = vmax.xlane.f32.xlu0 %v1030_v34 }
 0x5ab   : > { %v1024_v36 = vsel %vm242_vm2, %v1006_v33, -inf }
 0x5ac   : > { %1022 = vmax.xlane.f32.xlu1 %v1021_v35 }
 0x5ae   : > { %1025 = vmax.xlane.f32.xlu0 %v1024_v36 }
 0x5bd   : > { %826 = vrot.lane.b32.xlu1 %v1935_v28, %s1689_s14 }
 0x5c4   : > { %824 = vrot.lane.b32.xlu0 %v1930_v22, %s1689_s14 }
 0x627   : > { %v1017_v37 = vpop.xlane.xlu0 %1016 }
 0x628   : > { %v1035_v40 = vsub.f32 %v1003_v13, %v1017_v37 }
 0x62a   : > { %v1045_v48 = vmul.f32 1.442695, %v1035_v40 }
 0x62b   : > { %v1011_v41 = vpop.xlane.xlu0 %1010 }
 0x62c   : > { %v1033_v42 = vsub.f32 %v1001_v16, %v1011_v41 }
 0x62d   : > { %v1014_v49 = vpop.xlane.xlu1 %1013 }
 0x62e   : > { %v1041_v50 = vmul.f32 1.442695, %v1033_v42  ;;  %v1034_v52 = vsub.f32 %v1002_v24, %v1014_v49 }
 0x62f   : > { %v1020_v53 = vpop.xlane.xlu0 %1019 }
 0x630   : > { %1646 = vpow2.f32 %v1041_v50  ;;  %v1043_v54 = vmul.f32 1.442695, %v1034_v52  ;;  %v1036_v55 = vsub.f32 %v1004_v23, %v1020_v53 }
 0x631   : > { %1648 = vpow2.f32 %v1045_v48  ;;  %v1029_v57 = vpop.xlane.xlu1 %1028 }
 0x632   : > { %1650 = vpow2.f32 %v1043_v54  ;;  %v1047_v58 = vmul.f32 1.442695, %v1036_v55  ;;  %v1039_v28 = vsub.f32 %v1007_v27, %v1029_v57 }
 0x633   : > { %v1032_v59 = vpop.xlane.xlu0 %1031 }
 0x634   : > { %1652 = vpow2.f32 %v1047_v58  ;;  %v1040_v22 = vsub.f32 %v1008_v1, %v1032_v59  ;;  %v1053_v62 = vmul.f32 1.442695, %v1039_v28  ;;  %v1642_v1 = vld [vmem:[%s2043_s4 + $0x8] sm:$0xff]  }
 0x635   : > { %v1023_v39 = vpop.xlane.xlu1 %1022 }
 0x636   : > { %v1037_v61 = vsub.f32 %v1005_v32, %v1023_v39  ;;  %v1055_v47 = vmul.f32 1.442695, %v1040_v22 }
 0x637   : > { %v1026_v43 = vpop.xlane.xlu0 %1025 }
 0x638   : > { %v1049_v44 = vmul.f32 1.442695, %v1037_v61  ;;  %v1038_v45 = vsub.f32 %v1006_v33, %v1026_v43 }
 0x639   : > { %v827_v46 = vpop.permute.xlu1 %826 }
 0x63a   : > { %1654 = vpow2.f32 %v1049_v44  ;;  %v1051_v51 = vmul.f32 1.442695, %v1038_v45  ;;  %849 = vst.msk [vmem:[#allocation4 + $0x4] sm:$0xf] %vm783_vm3, %v827_v46 }
 0x63b   : > { %1656 = vpow2.f32 %v1053_v62  ;;  %v825_v63 = vpop.permute.xlu0 %824 }
 0x63c   : > { %1658 = vpow2.f32 %v1051_v51  ;;  %848 = vst.msk [vmem:[#allocation4] sm:$0xf] %vm783_vm3, %v825_v63 }
 0x63d   : > { %v1647_v9 = vpop.eup %1646  ;;  %1660 = vpow2.f32 %v1055_v47 }
 0x63e   : > { %v1649_v56 = vpop.eup %1648  ;;  %v1057_v60 = vsel %vm242_vm2, %v1647_v9, 0.0 }
 0x63f   : > { %v1651_v10 = vpop.eup %1650  ;;  %1058 = vadd.xlane.f32.xlu0 %v1057_v60  ;;  %v1063_v14 = vsel %vm242_vm2, %v1649_v56, 0.0 }
 0x640   : > { %v1060_v11 = vsel %vm242_vm2, %v1651_v10, 0.0  ;;  %v1081_v13 = vpack.c.bf16 %v1651_v10, %v1647_v9 }
 0x641   : > { %1061 = vadd.xlane.f32.xlu1 %v1060_v11  ;;  %v1653_v16 = vpop.eup %1652 }
 0x642   : > { %1591 = vmatprep.mubr.msk.bf16.mxu0 %vm242_vm2, %v1081_v13  ;;  %v1066_v19 = vsel %vm242_vm2, %v1653_v16, 0.0  ;;  %v1082_v23 = vpack.c.bf16 %v1653_v16, %v1649_v56  ;;  %v1220_v13 = vsub.s32 5, %v1826_v38 }
 0x643   : > { %1064 = vadd.xlane.f32.xlu0 %v1063_v14  ;;  %v1641_v17 = vld [vmem:[#allocation4] sm:$0xff]  }
 0x644   : > { %1589 = vmatprep.subr.bf16.mxu0 %v1641_v17  ;;  %v1221_v14 = vrot.slane %v1903_v2, %v1220_v13 }
 0x645   : > { %1590 = vmatpush3.bf16.msra.mxu0 %v1641_v17 }
 0x646   : > { %1599 = vmatprep.subr.bf16.mxu0 %v1642_v1 }
 0x647   : > { %v1655_v20 = vpop.eup %1654  ;;  %1067 = vadd.xlane.f32.xlu0 %v1066_v19 }
 0x648   : > { %v1657_v24 = vpop.eup %1656  ;;  %v1069_v25 = vsel %vm242_vm2, %v1655_v20, 0.0  ;;  %1592 = vmatmul.mubr.msk.bf16.vlgmr.msra.gmra.mxu0 %vm242_vm2, %v1082_v23 }
 0x649   : > { %v1659_v26 = vpop.eup %1658  ;;  %1070 = vadd.xlane.f32.xlu1 %v1069_v25  ;;  %v1075_v30 = vsel %vm242_vm2, %v1657_v24, 0.0  ;;  %1600 = vmatpush3.bf16.msra.mxu0 %v1642_v1 }
 0x64a   : > { %v1072_v27 = vsel %vm242_vm2, %v1659_v26, 0.0  ;;  %v1083_v29 = vpack.c.bf16 %v1659_v26, %v1655_v20  ;;  %v1661_v0 = vpop.eup %1660  ;;  %1601 = vmatprep.subr.bf16.mxu0 %v1643_v3 }
 0x64b   : > { %1073 = vadd.xlane.f32.xlu0 %v1072_v27  ;;  %v1078_v31 = vsel %vm242_vm2, %v1661_v0, 0.0  ;;  %v1084_v32 = vpack.c.bf16 %v1661_v0, %v1657_v24 }
 0x64c   : > { %1595 = vmatprep.mubr.msk.bf16.mxu0 %vm242_vm2, %v1083_v29 }
 0x64d   : > { %1076 = vadd.xlane.f32.xlu1 %v1075_v30  ;;  %1602 = vmatpush3.bf16.msra.mxu0 %v1643_v3 }
 0x64f   : > { %1079 = vadd.xlane.f32.xlu0 %v1078_v31 }
 0x650   : > { %1596 = vmatmul.mubr.msk.bf16.gmra.mxu0 %vm242_vm2, %v1084_v32 }
 0x6c8   : > { %v1059_v4 = vpop.xlane.xlu0 %1058 }
 0x6c9   : > { %1662 = vrcp.f32 %v1059_v4 }
 0x6ca   : > { %v1062_v35 = vpop.xlane.xlu1 %1061 }
 0x6cc   : > { %v1065_v33 = vpop.xlane.xlu0 %1064 }
 0x6d0   : > { %v1068_v34 = vpop.xlane.xlu0 %1067 }
 0x6d1   : > { %1664 = vrcp.f32 %v1068_v34 }
 0x6d2   : > { %1666 = vrcp.f32 %v1062_v35  ;;  %v1071_v37 = vpop.xlane.xlu1 %1070 }
 0x6d3   : > { %1668 = vrcp.f32 %v1065_v33 }
 0x6d4   : > { %v1074_v36 = vpop.xlane.xlu0 %1073  ;;  %1670 = vrcp.f32 %v1071_v37 }
 0x6d6   : > { %v1077_v41 = vpop.xlane.xlu1 %1076  ;;  %v1663_v49 = vpop.eup %1662 }
 0x6d8   : > { %v1080_v40 = vpop.xlane.xlu0 %1079 }
 0x6d9   : > { %1672 = vrcp.f32 %v1080_v40 }
 0x6da   : > { %1674 = vrcp.f32 %v1074_v36 }
 0x6db   : > { %1676 = vrcp.f32 %v1077_v41 }
 0x6de   : > { %v1665_v52 = vpop.eup %1664 }
 0x6df   : > { %v1667_v53 = vpop.eup %1666 }
 0x6e0   : > { %v1669_v57 = vpop.eup %1668 }
 0x6e1   : > { %v1671_v43 = vpop.eup %1670 }
 0x6e6   : > { %v1673_v45 = vpop.eup %1672 }
 0x6e7   : > { %v1675_v46 = vpop.eup %1674 }
 0x6e8   : > { %v1677_v63 = vpop.eup %1676 }
 0x708   : > { %v1593_v42 = vpop.f32.mrf.mxu0 }
 0x709   : > { %v1204_v59 = vmul.f32 %v1669_v57, %v1593_v42 }
 0x70a   : > { %v1163_v48 = vpop.f32.mrf.mxu0 }
 0x70b   : > { %v1202_v58 = vmul.f32 %v1663_v49, %v1163_v48 }
 0x70c   : > { %v1594_v50 = vpop.f32.mrf.mxu0 }
 0x70d   : > { %v1205_v54 = vmul.f32 %v1665_v52, %v1594_v50 }
 0x70e   : > { %v1166_v55 = vpop.f32.mrf.mxu0 }
 0x70f   : > { %v1203_v28 = vmul.f32 %v1667_v53, %v1166_v55  ;;  %v1211_v61 = vpack.c.bf16 %v1205_v54, %v1204_v59 }
 0x710   : > { %v1597_v39 = vpop.f32.mrf.mxu0 }
 0x711   : > { %v1210_v22 = vpack.c.bf16 %v1203_v28, %v1202_v58  ;;  %v1208_v60 = vmul.f32 %v1677_v63, %v1597_v39 }
 0x712   : > { %v1179_v62 = vpop.f32.mrf.mxu0 }
 0x713   : > { %1603 = vmatprep.mubr.msk.bf16.mxu0 %vm240_vm1, %v1210_v22  ;;  %v1206_v9 = vmul.f32 %v1671_v43, %v1179_v62 }
 0x714   : > { %v1598_v44 = vpop.f32.mrf.mxu0  ;;  %1604 = vmatmul.mubr.msk.bf16.vlgmr.msra.gmra.mxu0 %vm240_vm1, %v1211_v61 }
 0x715   : > { %v1209_v47 = vmul.f32 %v1673_v45, %v1598_v44 }
 0x716   : > { %v1182_v51 = vpop.f32.mrf.mxu0 }
 0x717   : > { %v1207_v56 = vmul.f32 %v1675_v46, %v1182_v51  ;;  %v1213_v11 = vpack.c.bf16 %v1209_v47, %v1208_v60 }
 0x719   : > { %v1212_v10 = vpack.c.bf16 %v1207_v56, %v1206_v9 }
 0x71b   : > { %1607 = vmatprep.mubr.msk.bf16.mxu0 %vm240_vm1, %v1212_v10 }
 0x71c   : > { %1608 = vmatmul.mubr.msk.bf16.gmra.mxu0 %vm240_vm1, %v1213_v11 }
 0x7d4   : > { %v1605_v16 = vpop.f32.mrf.mxu0 }
 0x7d5   : > { %v1289_v17 = vadd.f32 %v1605_v16, %v1221_v14 }
 0x7d6   : > { %v1280_v19 = vpop.f32.mrf.mxu0 }
 0x7d7   : > { %v1321_v20 = vadd.f32 %v1289_v17, %v1775_v7  ;;  %v1281_v23 = vadd.f32 %v1280_v19, %v1221_v14 }
 0x7d8   : > { %v1606_v24 = vpop.f32.mrf.mxu0 }
 0x7d9   : > { %1329 = vst.msk [vmem:[%s224_s24 + $0x10] sm:$0xff] %vm240_vm1, %v1321_v20  ;;  %v1319_v25 = vadd.f32 %v1281_v23, %v1771_v5  ;;  %v1292_v26 = vadd.f32 %v1606_v24, %v1221_v14 }
 0x7da   : > { %v1283_v38 = vpop.f32.mrf.mxu0 }
 0x7db   : > { %1327 = vst.msk [vmem:[%s224_s24] sm:$0xff] %vm240_vm1, %v1319_v25  ;;  %v1322_v2 = vadd.f32 %v1292_v26, %v1778_v8  ;;  %v1284_v27 = vadd.f32 %v1283_v38, %v1221_v14 }
 0x7dc   : > { %v1609_v29 = vpop.f32.mrf.mxu0 }
 0x7dd   : > { %1330 = vst.msk [vmem:[%s224_s24 + $0x18] sm:$0xff] %vm240_vm1, %v1322_v2  ;;  %v1320_v0 = vadd.f32 %v1284_v27, %v1773_v6  ;;  %v1305_v30 = vadd.f32 %v1609_v29, %v1221_v14 }
 0x7de   : > { %v1296_v7 = vpop.f32.mrf.mxu0 }
 0x7df   : > { %1328 = vst.msk [vmem:[%s224_s24 + $0x8] sm:$0xff] %vm240_vm1, %v1320_v0  ;;  %v1325_v31 = vadd.f32 %v1305_v30, %v1801_v18  ;;  %v1297_v32 = vadd.f32 %v1296_v7, %v1221_v14 }
 0x7e0   : > { %v1610_v5 = vpop.f32.mrf.mxu0 }
 0x7e1   : > { %1333 = vst.msk [vmem:[%s224_s24 + $0x30] sm:$0xff] %vm240_vm1, %v1325_v31  ;;  %v1323_v1 = vadd.f32 %v1297_v32, %v1789_v12  ;;  %v1308_v3 = vadd.f32 %v1610_v5, %v1221_v14 }
 0x7e2   : > { %v1299_v8 = vpop.f32.mrf.mxu0 }
 0x7e3   : > { %1331 = vst.msk [vmem:[%s224_s24 + $0x20] sm:$0xff] %vm240_vm1, %v1323_v1  ;;  %v1326_v4 = vadd.f32 %v1308_v3, %v1806_v21  ;;  %v1300_v33 = vadd.f32 %v1299_v8, %v1221_v14 }
 0x7e5   : > { %1334 = vst.msk [vmem:[%s224_s24 + $0x38] sm:$0xff] %vm240_vm1, %v1326_v4  ;;  %v1324_v6 = vadd.f32 %v1300_v33, %v1795_v15 }
 0x7e7   : > { %1332 = vst.msk [vmem:[%s224_s24 + $0x28] sm:$0xff] %vm240_vm1, %v1324_v6 }
 0x7e8 PF: > { %s15_s18 = sadd.s32 1, %s1684_s18  }
 0x7e9   : > { %p12_p4 = scmp.ge.s32.totalorder %s15_s18, 6  }
 0x7eb   :  { %14 = sbr.rel (!%p12_p4) target bundleno = 1 (0x1), region = 70 }

// kernel: tpu_custom_call.1
= control target key start
LH: loop header
LB: loop body
LE: loop exit
PB: predicated region body
PF: predicated region fallthrough
CT: control target
= control target key end

     0   :  { %s1721_s18 = smov 0   ;;  %s2039_s0 = inlined_call_operand.vmem [shape: f32[4,64,32], index: 0, kind: input, shape index: {}]   ;;  %s2040_s1 = inlined_call_operand.vmem [shape: f32[32,32], index: 1, kind: input, shape index: {}]   ;;  %s2041_s2 = inlined_call_operand.vmem [shape: f32[8,32], index: 2, kind: input, shape index: {}]   ;;  %s2042_s3 = inlined_call_operand.vmem [shape: bf16[32,96], index: 3, kind: input, shape index: {}]   ;;  %s2043_s4 = inlined_call_operand.vmem [shape: bf16[32,32], index: 4, kind: input, shape index: {}]   ;;  %s2044_s5 = inlined_call_operand.vmem [shape: f32[4,64,32], index: 5, kind: output, shape index: {}]  }
   0x1 LB: > { %s1390_s19 = sadd.s32 4294967295, %s1684_s18   ;;  %p1394_p0 = scmp.ge.s32.totalorder %s1684_s18, 1  ;;  %s1684_s18 = sphi %s1721_s18, %s15_s18  }
   0x2   : > { %p187_p1 = scmp.lt.s32.totalorder %s1684_s18, 5 }
   0x4   : > { %p188_p2 = pnand %p1394_p0, %p187_p1 }
   0x5   : > { %p215_p3 = scmp.lt.s32.totalorder (!%p188_p2), %s1390_s19, 3  ;;  %s1688_s13 = smov (!%p188_p2), 32  }
   0x6   : > { %191 = sbr.rel (%p188_p2) target bundleno = 2024 (0x7e8), region = 40  ;;  %s1689_s14 = smov (!%p188_p2), 64  }
   0x7   : > { %s1690_s15 = smov (!%p188_p2), 96  }
   0xb   : > { %v1732_v0 = vld [vmem:[%s2040_s1 + $0x18] sm:$0xff]  ;;  %v1737_v1 = vld [vmem:[%s2040_s1 + $0x10] sm:$0xff]  ;;  %v1686_v2 = vmov 0.0   ;;  %v1743_v3 = vld [vmem:[%s2040_s1 + $0x8] sm:$0xff]  ;;  %vm1687_vm0 = vmmov 0   ;;  %s2046_s19 = smov (!%p215_p3, %s1390_s19), 3  ;;  %v434_v37 = vlaneseq }
   0xc   : > { %1511 = vmatprep.subr.mxu0 %v1686_v2  ;;  %1519 = vmatprep.mubr.msk.f32.mxu0 %vm1687_vm0, %v1686_v2  ;;  %vm240_vm1 = vcmask 261120   ;;  %s1453_s26 = sshll.u32 %s2046_s19, 6  ;;  %v1761_v4 = vld [vmem:[%s2040_s1] sm:$0xff]  ;;  %vm242_vm2 = vcmask 523264   ;;  %vm783_vm3 = vcmask 257024  }
   0xd   : > { %1512 = vmatpush3.msra.mxu0 %v1732_v0  ;;  %1522 = vmatprep.subr.mxu1 %v1686_v2  ;;  %s219_s6 = scalar_lea.vmem %s2039_s0, %s1453_s26  ;;  %v1826_v38 = vshrl.u32 %v434_v37, 7  ;;  %s224_s24 = scalar_lea.vmem %s2044_s5, %s1453_s26 }
   0xe   : > { %1513 = vmatprep.subr.mxu0 %v1686_v2  ;;  %1523 = vmatpush3.xpose.msk.msra.mxu1 %vm240_vm1, %v1732_v0  ;;  %v1771_v5 = vld [vmem:[%s219_s6] sm:$0xff]  ;;  %v1773_v6 = vld [vmem:[%s219_s6 + $0x8] sm:$0xff]  ;;  %v1775_v7 = vld [vmem:[%s219_s6 + $0x10] sm:$0xff] }
   0xf   : > { %1514 = vmatpush3.msra.mxu0 %v1737_v1  ;;  %1524 = vmatprep.subr.mxu1 %v1686_v2  ;;  %v1778_v8 = vld [vmem:[%s219_s6 + $0x18] sm:$0xff]  ;;  %v252_v9 = vsel %vm240_vm1, %v1771_v5, 0.0  ;;  %v253_v10 = vsel %vm240_vm1, %v1773_v6, 0.0  ;;  %v255_v11 = vsel %vm240_vm1, %v1775_v7, 0.0  ;;  %v1789_v12 = vld [vmem:[%s219_s6 + $0x20] sm:$0xff]  ;;  %v1795_v15 = vld [vmem:[%s219_s6 + $0x28] sm:$0xff] }
  0x10   : > { %1515 = vmatprep.subr.mxu0 %v1686_v2  ;;  %1530 = vmatprep.mubr.msk.f32.mxu1 %vm1687_vm0, %v1686_v2  ;;  %v254_v13 = vadd.f32 %v253_v10, %v252_v9  ;;  %v257_v14 = vsel %vm240_vm1, %v1778_v8, 0.0  ;;  %v259_v17 = vsel %vm240_vm1, %v1789_v12, 0.0  ;;  %v1801_v18 = vld [vmem:[%s219_s6 + $0x30] sm:$0xff]  ;;  %v261_v20 = vsel %vm240_vm1, %v1795_v15, 0.0  ;;  %v1806_v21 = vld [vmem:[%s219_s6 + $0x38] sm:$0xff] }
  0x11   : > { %1516 = vmatpush3.msra.mxu0 %v1743_v3  ;;  %v263_v23 = vsel %vm240_vm1, %v1801_v18, 0.0  ;;  %v265_v25 = vsel %vm240_vm1, %v1806_v21, 0.0  ;;  %v436_v39 = vsub.s32 0, %v1826_v38 }
  0x12   : > { %1517 = vmatprep.subr.mxu0 %v1686_v2  ;;  %1525 = vmatpush3.xpose.msk.msra.mxu1 %vm240_vm1, %v1737_v1  ;;  %v256_v16 = vadd.f32 %v255_v11, %v254_v13 }
  0x13   : > { %1518 = vmatpush3.msra.mxu0 %v1761_v4  ;;  %1526 = vmatprep.subr.mxu1 %v1686_v2 }
  0x14   : > { %1533 = vmatprep.subr.mxu0 %v1686_v2  ;;  %v258_v19 = vadd.f32 %v257_v14, %v256_v16 }
  0x16   : > { %1527 = vmatpush3.xpose.msk.msra.mxu1 %vm240_vm1, %v1743_v3  ;;  %v260_v22 = vadd.f32 %v259_v17, %v258_v19 }
  0x17   : > { %1528 = vmatprep.subr.mxu1 %v1686_v2 }
  0x18   : > { %v262_v24 = vadd.f32 %v261_v20, %v260_v22 }
  0x1a   : > { %1529 = vmatpush3.xpose.msk.msra.mxu1 %vm240_vm1, %v1761_v4  ;;  %v264_v26 = vadd.f32 %v263_v23, %v262_v24 }
  0x1c   : > { %v266_v27 = vadd.f32 %v265_v25, %v264_v26 }
  0x1e   : > { %v267_v28 = vrot.slane %v266_v27, 4 }
  0x20   : > { %v268_v29 = vadd.f32 %v267_v28, %v266_v27 }
  0x22   : > { %v269_v30 = vrot.slane %v268_v29, 2 }
  0x24   : > { %v270_v31 = vadd.f32 %v269_v30, %v268_v29 }
  0x26   : > { %v271_v32 = vrot.slane %v270_v31, 1 }
  0x28   : > { %v272_v33 = vadd.f32 %v271_v32, %v270_v31 }
  0x2a   : > { %1520 = vmatmul.mubr.msk.f32.vlgmr.msra.gmra.mxu0 %vm240_vm1, %v272_v33 }
  0x2b   : > { %1534 = vmatpush3.msra.mxu0 %v1732_v0  ;;  %1541 = vmatprep.mubr.msk.f32.mxu0 %vm1687_vm0, %v1686_v2 }
  0x2c   : > { %1535 = vmatprep.subr.mxu0 %v1686_v2 }
  0x2d   : > { %1536 = vmatpush3.msra.mxu0 %v1737_v1 }
  0x2e   : > { %1537 = vmatprep.subr.mxu0 %v1686_v2 }
  0x2f   : > { %1538 = vmatpush3.msra.mxu0 %v1743_v3 }
  0x30   : > { %1539 = vmatprep.subr.mxu0 %v1686_v2 }
  0x31   : > { %1540 = vmatpush3.msra.mxu0 %v1761_v4 }
  0x32   : > { %1544 = vmatprep.subr.mxu0 %v1686_v2 }
  0xea   : > { %v343_v34 = vpop.f32.mrf.mxu0 }
  0xeb   : > { %v348_v35 = vmul.f32 0.015625, %v343_v34  ;;  %v640_v34 = vsub.s32 1, %v1826_v38 }
  0xec   : > { %v1521_v36 = vpop.f32.mrf.mxu0 }
  0xed   : > { %1531 = vmatmul.mubr.msk.f32.vlgmr.msra.gmra.mxu1 %vm240_vm1, %v348_v35 }
 0x1ad   : > { %v430_v40 = vpop.f32.mrf.mxu1 }
 0x1ae   : > { %v437_v41 = vrot.slane %v430_v40, %v436_v39 }
 0x1af   : > { %v1532_v42 = vpop.f32.mrf.mxu1 }
 0x1b0   : > { %v1832_v43 = vsub.f32 %v1771_v5, %v437_v41  ;;  %v1835_v44 = vsub.f32 %v1773_v6, %v437_v41  ;;  %v1838_v45 = vsub.f32 %v1775_v7, %v437_v41  ;;  %v1841_v46 = vsub.f32 %v1778_v8, %v437_v41 }
 0x1b1   : > { %v1844_v47 = vsub.f32 %v1789_v12, %v437_v41  ;;  %v1853_v51 = vsub.f32 %v1795_v15, %v437_v41  ;;  %v1860_v56 = vsub.f32 %v1801_v18, %v437_v41  ;;  %v1866_v60 = vsub.f32 %v1806_v21, %v437_v41 }
 0x1b2   : > { %v446_v48 = vmul.f32 %v1832_v43, %v1832_v43  ;;  %v447_v49 = vmul.f32 %v1835_v44, %v1835_v44  ;;  %v448_v50 = vmul.f32 %v1838_v45, %v1838_v45  ;;  %v449_v52 = vmul.f32 %v1841_v46, %v1841_v46 }
 0x1b3   : > { %v450_v57 = vmul.f32 %v1844_v47, %v1844_v47  ;;  %v451_v61 = vmul.f32 %v1853_v51, %v1853_v51  ;;  %v452_v9 = vmul.f32 %v1860_v56, %v1860_v56  ;;  %v453_v13 = vmul.f32 %v1866_v60, %v1866_v60 }
 0x1b4   : > { %v454_v53 = vsel %vm240_vm1, %v446_v48, 0.0  ;;  %v455_v54 = vsel %vm240_vm1, %v447_v49, 0.0  ;;  %v457_v58 = vsel %vm240_vm1, %v448_v50, 0.0  ;;  %v459_v62 = vsel %vm240_vm1, %v449_v52, 0.0 }
 0x1b5   : > { %v456_v55 = vadd.f32 %v455_v54, %v454_v53  ;;  %v461_v10 = vsel %vm240_vm1, %v450_v57, 0.0  ;;  %v463_v14 = vsel %vm240_vm1, %v451_v61, 0.0  ;;  %v465_v17 = vsel %vm240_vm1, %v452_v9, 0.0 }
 0x1b6   : > { %v467_v20 = vsel %vm240_vm1, %v453_v13, 0.0 }
 0x1b7   : > { %v458_v59 = vadd.f32 %v457_v58, %v456_v55 }
 0x1b9   : > { %v460_v63 = vadd.f32 %v459_v62, %v458_v59 }
 0x1bb   : > { %v462_v11 = vadd.f32 %v461_v10, %v460_v63 }
 0x1bd   : > { %v464_v16 = vadd.f32 %v463_v14, %v462_v11 }
 0x1bf   : > { %v466_v19 = vadd.f32 %v465_v17, %v464_v16 }
 0x1c1   : > { %v468_v22 = vadd.f32 %v467_v20, %v466_v19 }
 0x1c3   : > { %v469_v23 = vrot.slane %v468_v22, 4 }
 0x1c5   : > { %v470_v24 = vadd.f32 %v469_v23, %v468_v22 }
 0x1c7   : > { %v471_v25 = vrot.slane %v470_v24, 2 }
 0x1c9   : > { %v472_v26 = vadd.f32 %v471_v25, %v470_v24 }
 0x1cb   : > { %v473_v27 = vrot.slane %v472_v26, 1 }
 0x1cd   : > { %v474_v28 = vadd.f32 %v473_v27, %v472_v26 }
 0x1cf   : > { %1542 = vmatmul.mubr.msk.f32.vlgmr.msra.gmra.mxu0 %vm240_vm1, %v474_v28 }
 0x1d0   : > { %1545 = vmatpush3.xpose.msk.msra.mxu0 %vm240_vm1, %v1732_v0  ;;  %1552 = vmatprep.mubr.msk.f32.mxu0 %vm1687_vm0, %v1686_v2 }
 0x1d1   : > { %1546 = vmatprep.subr.mxu0 %v1686_v2 }
 0x1d4   : > { %1547 = vmatpush3.xpose.msk.msra.mxu0 %vm240_vm1, %v1737_v1  ;;  %v1628_v1 = vld [vmem:[%s2042_s3 + $0x8] sm:$0xff]  }
 0x1d5   : > { %1548 = vmatprep.subr.mxu0 %v1686_v2  ;;  %1555 = vmatprep.subr.bf16.mxu1 %v1628_v1 }
 0x1d6   : > { %1556 = vmatpush3.bf16.msra.mxu1 %v1628_v1 }
 0x1d8   : > { %1549 = vmatpush3.xpose.msk.msra.mxu0 %vm240_vm1, %v1743_v3  ;;  %v1629_v3 = vld [vmem:[%s2042_s3] sm:$0xff]  }
 0x1d9   : > { %1550 = vmatprep.subr.mxu0 %v1686_v2  ;;  %1557 = vmatprep.subr.bf16.mxu1 %v1629_v3  ;;  %v1903_v2 = vld [vmem:[%s2041_s2] sm:$0xff] }
 0x1da   : > { %1558 = vmatpush3.bf16.msra.mxu1 %v1629_v3  ;;  %v236_v33 = vrot.slane %v1903_v2, 2  ;;  %v641_v41 = vrot.slane %v1903_v2, %v640_v34 }
 0x1dc   : > { %1551 = vmatpush3.xpose.msk.msra.mxu0 %vm240_vm1, %v1761_v4  ;;  %v232_v4 = vrot.slane %v1903_v2, 1 }
 0x1de   : > { %233 = vrot.lane.b32.xlu0 %v232_v4, %s1688_s13 }
 0x1e2   : > { %237 = vrot.lane.b32.xlu0 %v236_v33, %s1689_s14 }
 0x250   : > { %v234_v63 = vpop.permute.xlu0 %233 }
 0x251   : > { %v241_v9 = vsel %vm240_vm1, %v1903_v2, %v234_v63 }
 0x28f   : > { %v545_v29 = vpop.f32.mrf.mxu0 }
 0x290   : > { %v549_v0 = vmul.f32 0.015625, %v545_v29 }
 0x291   : > { %v1543_v30 = vpop.f32.mrf.mxu0 }
 0x292   : > { %v550_v31 = vadd.f32 1e-06, %v549_v0 }
 0x294   : > { %1644 = vrsqrt.f32 %v550_v31 }
 0x2a1   : > { %v1645_v32 = vpop.eup %1644 }
 0x2a2   : > { %1553 = vmatmul.mubr.msk.f32.vlgmr.msra.gmra.mxu0 %vm240_vm1, %v1645_v32 }
 0x362   : > { %v621_v35 = vpop.f32.mrf.mxu0 }
 0x363   : > { %v625_v36 = vmul.f32 %v621_v35, %v1903_v2 }
 0x364   : > { %v1554_v37 = vpop.f32.mrf.mxu0 }
 0x365   : > { %v629_v40 = vrot.slane %v625_v36, %v436_v39 }
 0x367   : > { %v630_v42 = vmul.f32 %v629_v40, %v1832_v43  ;;  %v631_v48 = vmul.f32 %v629_v40, %v1835_v44  ;;  %v632_v49 = vmul.f32 %v629_v40, %v1838_v45  ;;  %v633_v50 = vmul.f32 %v629_v40, %v1841_v46 }
 0x368   : > { %v634_v52 = vmul.f32 %v629_v40, %v1844_v47  ;;  %v635_v53 = vmul.f32 %v629_v40, %v1853_v51  ;;  %v636_v43 = vmul.f32 %v629_v40, %v1860_v56  ;;  %v637_v44 = vmul.f32 %v629_v40, %v1866_v60  ;;  %v238_v56 = vpop.permute.xlu0 %237 }
 0x369   : > { %v642_v54 = vadd.f32 %v641_v41, %v630_v42  ;;  %v643_v55 = vadd.f32 %v641_v41, %v631_v48  ;;  %v644_v57 = vadd.f32 %v641_v41, %v632_v49  ;;  %v645_v58 = vadd.f32 %v641_v41, %v633_v50 }
 0x36a   : > { %v646_v59 = vadd.f32 %v641_v41, %v634_v52  ;;  %v647_v39 = vadd.f32 %v641_v41, %v635_v53  ;;  %v648_v46 = vadd.f32 %v641_v41, %v636_v43  ;;  %v649_v47 = vadd.f32 %v641_v41, %v637_v44 }
 0x36b   : > { %v650_v61 = vpack.c.bf16 %v643_v55, %v642_v54  ;;  %v651_v62 = vpack.c.bf16 %v645_v58, %v644_v57  ;;  %v660_v60 = vsub.s32 2, %v1826_v38  ;;  %v243_v10 = vsel %vm242_vm2, %v241_v9, %v238_v56 }
 0x36c   : > { %v652_v45 = vpack.c.bf16 %v647_v39, %v646_v59  ;;  %v653_v51 = vpack.c.bf16 %v649_v47, %v648_v46 }
 0x36d   : > { %1559 = vmatprep.mubr.msk.bf16.mxu1 %vm240_vm1, %v650_v61  ;;  %v661_v11 = vrot.slane %v243_v10, %v660_v60 }
 0x36e   : > { %1560 = vmatmul.mubr.msk.bf16.vlgmr.msra.gmra.mxu1 %vm240_vm1, %v651_v62 }
 0x36f   : > { %1563 = vmatprep.mubr.msk.bf16.mxu1 %vm240_vm1, %v652_v45 }
 0x376   : > { %1564 = vmatmul.mubr.msk.bf16.gmra.mxu1 %vm240_vm1, %v653_v51 }
 0x42e   : > { %v1561_v13 = vpop.f32.mrf.mxu1 }
 0x42f   : > { %v729_v14 = vadd.f32 %v1561_v13, %v661_v11 }
 0x430   : > { %v720_v16 = vpop.f32.mrf.mxu1 }
 0x431   : > { %v1457_v17 = vpack.c.bf16 %v729_v14, %v729_v14  ;;  %v721_v19 = vadd.f32 %v720_v16, %v661_v11 }
 0x432   : > { %v1562_v20 = vpop.f32.mrf.mxu1 }
 0x433   : > { %786 = vst.msk [vmem:[#allocation2 + $0x8] sm:$0xf] %vm783_vm3, %v1457_v17  ;;  %v1930_v22 = vpack.c.bf16 %v721_v19, %v721_v19  ;;  %v732_v23 = vadd.f32 %v1562_v20, %v661_v11 }
 0x434   : > { %v723_v24 = vpop.f32.mrf.mxu1 }
 0x435   : > { %784 = vst.msk [vmem:[#allocation2] sm:$0xf] %vm783_vm3, %v1930_v22  ;;  %v1458_v25 = vpack.c.bf16 %v732_v23, %v732_v23  ;;  %v724_v26 = vadd.f32 %v723_v24, %v661_v11 }
 0x436   : > { %v1565_v27 = vpop.f32.mrf.mxu1 }
 0x437   : > { %787 = vst.msk [vmem:[#allocation2 + $0xc] sm:$0xf] %vm783_vm3, %v1458_v25  ;;  %v1935_v28 = vpack.c.bf16 %v724_v26, %v724_v26  ;;  %v745_v29 = vadd.f32 %v1565_v27, %v661_v11 }
 0x438   : > { %v736_v0 = vpop.f32.mrf.mxu1 }
 0x439   : > { %785 = vst.msk [vmem:[#allocation2 + $0x4] sm:$0xf] %vm783_vm3, %v1935_v28  ;;  %v1461_v30 = vpack.c.bf16 %v745_v29, %v745_v29  ;;  %v737_v31 = vadd.f32 %v736_v0, %v661_v11 }
 0x43a   : > { %v1566_v32 = vpop.f32.mrf.mxu1 }
 0x43b   : > { %790 = vst.msk [vmem:[#allocation2 + $0x18] sm:$0xf] %vm783_vm3, %v1461_v30  ;;  %v1459_v1 = vpack.c.bf16 %v737_v31, %v737_v31  ;;  %v748_v3 = vadd.f32 %v1566_v32, %v661_v11  ;;  %804 = vrot.lane.b32.xlu1 %v1461_v30, %s1690_s15 }
 0x43c   : > { %v739_v4 = vpop.f32.mrf.mxu1 }
 0x43d   : > { %788 = vst.msk [vmem:[#allocation2 + $0x10] sm:$0xf] %vm783_vm3, %v1459_v1  ;;  %v1462_v33 = vpack.c.bf16 %v748_v3, %v748_v3  ;;  %v740_v34 = vadd.f32 %v739_v4, %v661_v11  ;;  %800 = vrot.lane.b32.xlu0 %v1459_v1, %s1690_s15 }
 0x43e   : > { %v1638_v56 = vld [vmem:[#allocation2 + $0x8] sm:$0xff]  }
 0x43f   : > { %791 = vst.msk [vmem:[#allocation2 + $0x1c] sm:$0xf] %vm783_vm3, %v1462_v33  ;;  %v1460_v35 = vpack.c.bf16 %v740_v34, %v740_v34  ;;  %806 = vrot.lane.b32.xlu1 %v1462_v33, %s1690_s15 }
 0x440   : > { %v1630_v36 = vld [vmem:[#allocation2] sm:$0xff]  }
 0x441   : > { %789 = vst.msk [vmem:[#allocation2 + $0x14] sm:$0xf] %vm783_vm3, %v1460_v35  ;;  %796 = vrot.lane.b32.xlu0 %v1457_v17, %s1690_s15  ;;  %1575 = vmatprep.mubr.msk.bf16.mxu1 %vm240_vm1, %v1630_v36 }
 0x443   : > { %802 = vrot.lane.b32.xlu1 %v1460_v35, %s1690_s15 }
 0x445   : > { %792 = vrot.lane.b32.xlu0 %v1930_v22, %s1690_s15 }
 0x446   : > { %v1640_v10 = vld [vmem:[#allocation2 + $0x18] sm:$0xff]  }
 0x447   : > { %798 = vrot.lane.b32.xlu1 %v1458_v25, %s1690_s15 }
 0x448   : > { %v1639_v60 = vld [vmem:[#allocation2 + $0x10] sm:$0xff]  }
 0x449   : > { %838 = vrot.lane.b32.xlu0 %v1462_v33, %s1689_s14 }
 0x44b   : > { %794 = vrot.lane.b32.xlu1 %v1935_v28, %s1690_s15 }
 0x44d   : > { %834 = vrot.lane.b32.xlu0 %v1460_v35, %s1689_s14 }
 0x44f   : > { %836 = vrot.lane.b32.xlu1 %v1461_v30, %s1689_s14 }
 0x453   : > { %832 = vrot.lane.b32.xlu1 %v1459_v1, %s1689_s14 }
 0x457   : > { %828 = vrot.lane.b32.xlu1 %v1457_v17, %s1689_s14 }
 0x45b   : > { %830 = vrot.lane.b32.xlu1 %v1458_v25, %s1689_s14 }
 0x4ad   : > { %v805_v37 = vpop.permute.xlu1 %804 }
 0x4ae   : > { %822 = vst.msk [vmem:[#allocation3 + $0x18] sm:$0xf] %vm783_vm3, %v805_v37 }
 0x4af   : > { %v801_v40 = vpop.permute.xlu0 %800 }
 0x4b0   : > { %820 = vst.msk [vmem:[#allocation3 + $0x10] sm:$0xf] %vm783_vm3, %v801_v40 }
 0x4b1   : > { %v807_v41 = vpop.permute.xlu1 %806 }
 0x4b2   : > { %823 = vst.msk [vmem:[#allocation3 + $0x1c] sm:$0xf] %vm783_vm3, %v807_v41 }
 0x4b3   : > { %v797_v42 = vpop.permute.xlu0 %796 }
 0x4b4   : > { %818 = vst.msk [vmem:[#allocation3 + $0x8] sm:$0xf] %vm783_vm3, %v797_v42 }
 0x4b5   : > { %v803_v48 = vpop.permute.xlu1 %802 }
 0x4b6   : > { %821 = vst.msk [vmem:[#allocation3 + $0x14] sm:$0xf] %vm783_vm3, %v803_v48 }
 0x4b7   : > { %v793_v49 = vpop.permute.xlu0 %792 }
 0x4b8   : > { %816 = vst.msk [vmem:[#allocation3] sm:$0xf] %vm783_vm3, %v793_v49 }
 0x4b9   : > { %v799_v50 = vpop.permute.xlu1 %798  ;;  %v1631_v52 = vld [vmem:[#allocation3 + $0x18] sm:$0xff]  }
 0x4ba   : > { %819 = vst.msk [vmem:[#allocation3 + $0xc] sm:$0xf] %vm783_vm3, %v799_v50  ;;  %1611 = vmatprep.subr.msk.bf16.mxu1 %vm240_vm1, %v1631_v52  ;;  %v934_v54 = vsel %vm240_vm1, %v1631_v52, 0 }
 0x4bb   : > { %v839_v53 = vpop.permute.xlu0 %838  ;;  %1568 = vmatpush3.bf16.xpose.msra.mxu1 %v934_v54 }
 0x4bc   : > { %855 = vst.msk [vmem:[#allocation4 + $0x1c] sm:$0xf] %vm783_vm3, %v839_v53 }
 0x4bd   : > { %v795_v55 = vpop.permute.xlu1 %794  ;;  %v1632_v57 = vld [vmem:[#allocation3 + $0x10] sm:$0xff]  }
 0x4be   : > { %817 = vst.msk [vmem:[#allocation3 + $0x4] sm:$0xf] %vm783_vm3, %v795_v55  ;;  %1612 = vmatprep.subr.msk.bf16.mxu1 %vm240_vm1, %v1632_v57  ;;  %v931_v39 = vsel %vm240_vm1, %v1632_v57, 0 }
 0x4bf   : > { %v835_v58 = vpop.permute.xlu0 %834 }
 0x4c0   : > { %853 = vst.msk [vmem:[#allocation4 + $0x14] sm:$0xf] %vm783_vm3, %v835_v58 }
 0x4c1   : > { %v837_v59 = vpop.permute.xlu1 %836  ;;  %v1633_v61 = vld [vmem:[#allocation3 + $0x8] sm:$0xff]  }
 0x4c2   : > { %854 = vst.msk [vmem:[#allocation4 + $0x18] sm:$0xf] %vm783_vm3, %v837_v59  ;;  %v928_v45 = vsel %vm240_vm1, %v1633_v61, 0 }
 0x4c3   : > { %1570 = vmatpush3.bf16.xpose.msra.mxu1 %v931_v39 }
 0x4c4   : > { %1613 = vmatprep.subr.msk.bf16.mxu1 %vm240_vm1, %v1633_v61 }
 0x4c5   : > { %v833_v62 = vpop.permute.xlu1 %832  ;;  %v1635_v46 = vld [vmem:[#allocation3] sm:$0xff]  }
 0x4c6   : > { %852 = vst.msk [vmem:[#allocation4 + $0x10] sm:$0xf] %vm783_vm3, %v833_v62  ;;  %v925_v63 = vsel %vm240_vm1, %v1635_v46, 0 }
 0x4c9   : > { %v829_v43 = vpop.permute.xlu1 %828  ;;  %v1634_v44 = vld [vmem:[#allocation4 + $0x18] sm:$0xff]  }
 0x4ca   : > { %850 = vst.msk [vmem:[#allocation4 + $0x8] sm:$0xf] %vm783_vm3, %v829_v43  ;;  %1583 = vmatprep.subr.bf16.mxu0 %v1634_v44 }
 0x4cb   : > { %1572 = vmatpush3.bf16.xpose.msra.mxu1 %v928_v45  ;;  %1584 = vmatpush3.bf16.msra.mxu0 %v1634_v44 }
 0x4cc   : > { %1614 = vmatprep.subr.msk.bf16.mxu1 %vm240_vm1, %v1635_v46 }
 0x4cd   : > { %v831_v47 = vpop.permute.xlu1 %830  ;;  %v1636_v51 = vld [vmem:[#allocation4 + $0x10] sm:$0xff]  }
 0x4ce   : > { %851 = vst.msk [vmem:[#allocation4 + $0xc] sm:$0xf] %vm783_vm3, %v831_v47  ;;  %1585 = vmatprep.subr.bf16.mxu0 %v1636_v51 }
 0x4cf   : > { %1586 = vmatpush3.bf16.msra.mxu0 %v1636_v51 }
 0x4d3   : > { %1574 = vmatpush3.bf16.xpose.msra.mxu1 %v925_v63 }
 0x4d5   : > { %v1637_v9 = vld [vmem:[#allocation4 + $0x8] sm:$0xff]  }
 0x4d6   : > { %1587 = vmatprep.subr.bf16.mxu0 %v1637_v9 }
 0x4d7   : > { %1588 = vmatpush3.bf16.msra.mxu0 %v1637_v9 }
 0x4da   : > { %1576 = vmatmul.mubr.msk.bf16.vlgmr.msra.gmra.mxu1 %vm240_vm1, %v1638_v56 }
 0x4db   : > { %1579 = vmatprep.mubr.msk.bf16.mxu1 %vm240_vm1, %v1639_v60 }
 0x4e2   : > { %1580 = vmatmul.mubr.msk.bf16.gmra.mxu1 %vm240_vm1, %v1640_v10 }
 0x59a   : > { %v1577_v11 = vpop.f32.mrf.mxu1 }
 0x59b   : > { %v1003_v13 = vmul.f32 0.17677669, %v1577_v11 }
 0x59c   : > { %v970_v14 = vpop.f32.mrf.mxu1 }
 0x59d   : > { %v1001_v16 = vmul.f32 0.17677669, %v970_v14  ;;  %v1015_v17 = vsel %vm242_vm2, %v1003_v13, -inf }
 0x59e   : > { %1016 = vmax.xlane.f32.xlu0 %v1015_v17  ;;  %v1578_v19 = vpop.f32.mrf.mxu1 }
 0x59f   : > { %v1004_v23 = vmul.f32 0.17677669, %v1578_v19  ;;  %v1009_v25 = vsel %vm242_vm2, %v1001_v16, -inf }
 0x5a0   : > { %v973_v20 = vpop.f32.mrf.mxu1 }
 0x5a1   : > { %v1002_v24 = vmul.f32 0.17677669, %v973_v20  ;;  %v1018_v30 = vsel %vm242_vm2, %v1004_v23, -inf }
 0x5a2   : > { %1010 = vmax.xlane.f32.xlu0 %v1009_v25  ;;  %v1581_v26 = vpop.f32.mrf.mxu1 }
 0x5a3   : > { %v1007_v27 = vmul.f32 0.17677669, %v1581_v26  ;;  %v1012_v29 = vsel %vm242_vm2, %v1002_v24, -inf }
 0x5a4   : > { %1013 = vmax.xlane.f32.xlu1 %v1012_v29  ;;  %v986_v0 = vpop.f32.mrf.mxu1 }
 0x5a5   : > { %v1005_v32 = vmul.f32 0.17677669, %v986_v0  ;;  %v1027_v3 = vsel %vm242_vm2, %v1007_v27, -inf }
 0x5a6   : > { %1019 = vmax.xlane.f32.xlu0 %v1018_v30  ;;  %v1582_v31 = vpop.f32.mrf.mxu1 }
 0x5a7   : > { %v1008_v1 = vmul.f32 0.17677669, %v1582_v31  ;;  %v1021_v35 = vsel %vm242_vm2, %v1005_v32, -inf }
 0x5a8   : > { %1028 = vmax.xlane.f32.xlu1 %v1027_v3  ;;  %v989_v4 = vpop.f32.mrf.mxu1  ;;  %v1643_v3 = vld [vmem:[%s2043_s4] sm:$0xff]  }
 0x5a9   : > { %v1006_v33 = vmul.f32 0.17677669, %v989_v4  ;;  %v1030_v34 = vsel %vm242_vm2, %v1008_v1, -inf }
 0x5aa   : > { %1031 = vmax.xlane.f32.xlu0 %v1030_v34 }
 0x5ab   : > { %v1024_v36 = vsel %vm242_vm2, %v1006_v33, -inf }
 0x5ac   : > { %1022 = vmax.xlane.f32.xlu1 %v1021_v35 }
 0x5ae   : > { %1025 = vmax.xlane.f32.xlu0 %v1024_v36 }
 0x5bd   : > { %826 = vrot.lane.b32.xlu1 %v1935_v28, %s1689_s14 }
 0x5c4   : > { %824 = vrot.lane.b32.xlu0 %v1930_v22, %s1689_s14 }
 0x627   : > { %v1017_v37 = vpop.xlane.xlu0 %1016 }
 0x628   : > { %v1035_v40 = vsub.f32 %v1003_v13, %v1017_v37 }
 0x62a   : > { %v1045_v48 = vmul.f32 1.442695, %v1035_v40 }
 0x62b   : > { %v1011_v41 = vpop.xlane.xlu0 %1010 }
 0x62c   : > { %v1033_v42 = vsub.f32 %v1001_v16, %v1011_v41 }
 0x62d   : > { %v1014_v49 = vpop.xlane.xlu1 %1013 }
 0x62e   : > { %v1041_v50 = vmul.f32 1.442695, %v1033_v42  ;;  %v1034_v52 = vsub.f32 %v1002_v24, %v1014_v49 }
 0x62f   : > { %v1020_v53 = vpop.xlane.xlu0 %1019 }
 0x630   : > { %1646 = vpow2.f32 %v1041_v50  ;;  %v1043_v54 = vmul.f32 1.442695, %v1034_v52  ;;  %v1036_v55 = vsub.f32 %v1004_v23, %v1020_v53 }
 0x631   : > { %1648 = vpow2.f32 %v1045_v48  ;;  %v1029_v57 = vpop.xlane.xlu1 %1028 }
 0x632   : > { %1650 = vpow2.f32 %v1043_v54  ;;  %v1047_v58 = vmul.f32 1.442695, %v1036_v55  ;;  %v1039_v28 = vsub.f32 %v1007_v27, %v1029_v57 }
 0x633   : > { %v1032_v59 = vpop.xlane.xlu0 %1031 }
 0x634   : > { %1652 = vpow2.f32 %v1047_v58  ;;  %v1040_v22 = vsub.f32 %v1008_v1, %v1032_v59  ;;  %v1053_v62 = vmul.f32 1.442695, %v1039_v28  ;;  %v1642_v1 = vld [vmem:[%s2043_s4 + $0x8] sm:$0xff]  }
 0x635   : > { %v1023_v39 = vpop.xlane.xlu1 %1022 }
 0x636   : > { %v1037_v61 = vsub.f32 %v1005_v32, %v1023_v39  ;;  %v1055_v47 = vmul.f32 1.442695, %v1040_v22 }
 0x637   : > { %v1026_v43 = vpop.xlane.xlu0 %1025 }
 0x638   : > { %v1049_v44 = vmul.f32 1.442695, %v1037_v61  ;;  %v1038_v45 = vsub.f32 %v1006_v33, %v1026_v43 }
 0x639   : > { %v827_v46 = vpop.permute.xlu1 %826 }
 0x63a   : > { %1654 = vpow2.f32 %v1049_v44  ;;  %v1051_v51 = vmul.f32 1.442695, %v1038_v45  ;;  %849 = vst.msk [vmem:[#allocation4 + $0x4] sm:$0xf] %vm783_vm3, %v827_v46 }
 0x63b   : > { %1656 = vpow2.f32 %v1053_v62  ;;  %v825_v63 = vpop.permute.xlu0 %824 }
 0x63c   : > { %1658 = vpow2.f32 %v1051_v51  ;;  %848 = vst.msk [vmem:[#allocation4] sm:$0xf] %vm783_vm3, %v825_v63 }
 0x63d   : > { %v1647_v9 = vpop.eup %1646  ;;  %1660 = vpow2.f32 %v1055_v47 }
 0x63e   : > { %v1649_v56 = vpop.eup %1648  ;;  %v1057_v60 = vsel %vm242_vm2, %v1647_v9, 0.0 }
 0x63f   : > { %v1651_v10 = vpop.eup %1650  ;;  %1058 = vadd.xlane.f32.xlu0 %v1057_v60  ;;  %v1063_v14 = vsel %vm242_vm2, %v1649_v56, 0.0 }
 0x640   : > { %v1060_v11 = vsel %vm242_vm2, %v1651_v10, 0.0  ;;  %v1081_v13 = vpack.c.bf16 %v1651_v10, %v1647_v9 }
 0x641   : > { %1061 = vadd.xlane.f32.xlu1 %v1060_v11  ;;  %v1653_v16 = vpop.eup %1652 }
 0x642   : > { %1591 = vmatprep.mubr.msk.bf16.mxu0 %vm242_vm2, %v1081_v13  ;;  %v1066_v19 = vsel %vm242_vm2, %v1653_v16, 0.0  ;;  %v1082_v23 = vpack.c.bf16 %v1653_v16, %v1649_v56  ;;  %v1220_v13 = vsub.s32 5, %v1826_v38 }
 0x643   : > { %1064 = vadd.xlane.f32.xlu0 %v1063_v14  ;;  %v1641_v17 = vld [vmem:[#allocation4] sm:$0xff]  }
 0x644   : > { %1589 = vmatprep.subr.bf16.mxu0 %v1641_v17  ;;  %v1221_v14 = vrot.slane %v1903_v2, %v1220_v13 }
 0x645   : > { %1590 = vmatpush3.bf16.msra.mxu0 %v1641_v17 }
 0x646   : > { %1599 = vmatprep.subr.bf16.mxu0 %v1642_v1 }
 0x647   : > { %v1655_v20 = vpop.eup %1654  ;;  %1067 = vadd.xlane.f32.xlu0 %v1066_v19 }
 0x648   : > { %v1657_v24 = vpop.eup %1656  ;;  %v1069_v25 = vsel %vm242_vm2, %v1655_v20, 0.0  ;;  %1592 = vmatmul.mubr.msk.bf16.vlgmr.msra.gmra.mxu0 %vm242_vm2, %v1082_v23 }
 0x649   : > { %v1659_v26 = vpop.eup %1658  ;;  %1070 = vadd.xlane.f32.xlu1 %v1069_v25  ;;  %v1075_v30 = vsel %vm242_vm2, %v1657_v24, 0.0  ;;  %1600 = vmatpush3.bf16.msra.mxu0 %v1642_v1 }
 0x64a   : > { %v1072_v27 = vsel %vm242_vm2, %v1659_v26, 0.0  ;;  %v1083_v29 = vpack.c.bf16 %v1659_v26, %v1655_v20  ;;  %v1661_v0 = vpop.eup %1660  ;;  %1601 = vmatprep.subr.bf16.mxu0 %v1643_v3 }
 0x64b   : > { %1073 = vadd.xlane.f32.xlu0 %v1072_v27  ;;  %v1078_v31 = vsel %vm242_vm2, %v1661_v0, 0.0  ;;  %v1084_v32 = vpack.c.bf16 %v1661_v0, %v1657_v24 }
 0x64c   : > { %1595 = vmatprep.mubr.msk.bf16.mxu0 %vm242_vm2, %v1083_v29 }
 0x64d   : > { %1076 = vadd.xlane.f32.xlu1 %v1075_v30  ;;  %1602 = vmatpush3.bf16.msra.mxu0 %v1643_v3 }
 0x64f   : > { %1079 = vadd.xlane.f32.xlu0 %v1078_v31 }
 0x650   : > { %1596 = vmatmul.mubr.msk.bf16.gmra.mxu0 %vm242_vm2, %v1084_v32 }
 0x6c8   : > { %v1059_v4 = vpop.xlane.xlu0 %1058 }
 0x6c9   : > { %1662 = vrcp.f32 %v1059_v4 }
 0x6ca   : > { %v1062_v35 = vpop.xlane.xlu1 %1061 }
 0x6cc   : > { %v1065_v33 = vpop.xlane.xlu0 %1064 }
 0x6d0   : > { %v1068_v34 = vpop.xlane.xlu0 %1067 }
 0x6d1   : > { %1664 = vrcp.f32 %v1068_v34 }
 0x6d2   : > { %1666 = vrcp.f32 %v1062_v35  ;;  %v1071_v37 = vpop.xlane.xlu1 %1070 }
 0x6d3   : > { %1668 = vrcp.f32 %v1065_v33 }
 0x6d4   : > { %v1074_v36 = vpop.xlane.xlu0 %1073  ;;  %1670 = vrcp.f32 %v1071_v37 }
 0x6d6   : > { %v1077_v41 = vpop.xlane.xlu1 %1076  ;;  %v1663_v49 = vpop.eup %1662 }
 0x6d8   : > { %v1080_v40 = vpop.xlane.xlu0 %1079 }
 0x6d9   : > { %1672 = vrcp.f32 %v1080_v40 }
 0x6da   : > { %1674 = vrcp.f32 %v1074_v36 }
 0x6db   : > { %1676 = vrcp.f32 %v1077_v41 }
 0x6de   : > { %v1665_v52 = vpop.eup %1664 }
 0x6df   : > { %v1667_v53 = vpop.eup %1666 }
 0x6e0   : > { %v1669_v57 = vpop.eup %1668 }
 0x6e1   : > { %v1671_v43 = vpop.eup %1670 }
 0x6e6   : > { %v1673_v45 = vpop.eup %1672 }
 0x6e7   : > { %v1675_v46 = vpop.eup %1674 }
 0x6e8   : > { %v1677_v63 = vpop.eup %1676 }
 0x708   : > { %v1593_v42 = vpop.f32.mrf.mxu0 }
 0x709   : > { %v1204_v59 = vmul.f32 %v1669_v57, %v1593_v42 }
 0x70a   : > { %v1163_v48 = vpop.f32.mrf.mxu0 }
 0x70b   : > { %v1202_v58 = vmul.f32 %v1663_v49, %v1163_v48 }
 0x70c   : > { %v1594_v50 = vpop.f32.mrf.mxu0 }
 0x70d   : > { %v1205_v54 = vmul.f32 %v1665_v52, %v1594_v50 }
 0x70e   : > { %v1166_v55 = vpop.f32.mrf.mxu0 }
 0x70f   : > { %v1203_v28 = vmul.f32 %v1667_v53, %v1166_v55  ;;  %v1211_v61 = vpack.c.bf16 %v1205_v54, %v1204_v59 }
 0x710   : > { %v1597_v39 = vpop.f32.mrf.mxu0 }
 0x711   : > { %v1210_v22 = vpack.c.bf16 %v1203_v28, %v1202_v58  ;;  %v1208_v60 = vmul.f32 %v1677_v63, %v1597_v39 }
 0x712   : > { %v1179_v62 = vpop.f32.mrf.mxu0 }
 0x713   : > { %1603 = vmatprep.mubr.msk.bf16.mxu0 %vm240_vm1, %v1210_v22  ;;  %v1206_v9 = vmul.f32 %v1671_v43, %v1179_v62 }
 0x714   : > { %v1598_v44 = vpop.f32.mrf.mxu0  ;;  %1604 = vmatmul.mubr.msk.bf16.vlgmr.msra.gmra.mxu0 %vm240_vm1, %v1211_v61 }
 0x715   : > { %v1209_v47 = vmul.f32 %v1673_v45, %v1598_v44 }
 0x716   : > { %v1182_v51 = vpop.f32.mrf.mxu0 }
 0x717   : > { %v1207_v56 = vmul.f32 %v1675_v46, %v1182_v51  ;;  %v1213_v11 = vpack.c.bf16 %v1209_v47, %v1208_v60 }
 0x719   : > { %v1212_v10 = vpack.c.bf16 %v1207_v56, %v1206_v9 }
 0x71b   : > { %1607 = vmatprep.mubr.msk.bf16.mxu0 %vm240_vm1, %v1212_v10 }
 0x71c   : > { %1608 = vmatmul.mubr.msk.bf16.gmra.mxu0 %vm240_vm1, %v1213_v11 }
 0x7d4   : > { %v1605_v16 = vpop.f32.mrf.mxu0 }
 0x7d5   : > { %v1289_v17 = vadd.f32 %v1605_v16, %v1221_v14 }
 0x7d6   : > { %v1280_v19 = vpop.f32.mrf.mxu0 }
 0x7d7   : > { %v1321_v20 = vadd.f32 %v1289_v17, %v1775_v7  ;;  %v1281_v23 = vadd.f32 %v1280_v19, %v1221_v14 }
 0x7d8   : > { %v1606_v24 = vpop.f32.mrf.mxu0 }
 0x7d9   : > { %1329 = vst.msk [vmem:[%s224_s24 + $0x10] sm:$0xff] %vm240_vm1, %v1321_v20  ;;  %v1319_v25 = vadd.f32 %v1281_v23, %v1771_v5  ;;  %v1292_v26 = vadd.f32 %v1606_v24, %v1221_v14 }
 0x7da   : > { %v1283_v38 = vpop.f32.mrf.mxu0 }
 0x7db   : > { %1327 = vst.msk [vmem:[%s224_s24] sm:$0xff] %vm240_vm1, %v1319_v25  ;;  %v1322_v2 = vadd.f32 %v1292_v26, %v1778_v8  ;;  %v1284_v27 = vadd.f32 %v1283_v38, %v1221_v14 }
 0x7dc   : > { %v1609_v29 = vpop.f32.mrf.mxu0 }
 0x7dd   : > { %1330 = vst.msk [vmem:[%s224_s24 + $0x18] sm:$0xff] %vm240_vm1, %v1322_v2  ;;  %v1320_v0 = vadd.f32 %v1284_v27, %v1773_v6  ;;  %v1305_v30 = vadd.f32 %v1609_v29, %v1221_v14 }
 0x7de   : > { %v1296_v7 = vpop.f32.mrf.mxu0 }
 0x7df   : > { %1328 = vst.msk [vmem:[%s224_s24 + $0x8] sm:$0xff] %vm240_vm1, %v1320_v0  ;;  %v1325_v31 = vadd.f32 %v1305_v30, %v1801_v18  ;;  %v1297_v32 = vadd.f32 %v1296_v7, %v1221_v14 }
 0x7e0   : > { %v1610_v5 = vpop.f32.mrf.mxu0 }
 0x7e1   : > { %1333 = vst.msk [vmem:[%s224_s24 + $0x30] sm:$0xff] %vm240_vm1, %v1325_v31  ;;  %v1323_v1 = vadd.f32 %v1297_v32, %v1789_v12  ;;  %v1308_v3 = vadd.f32 %v1610_v5, %v1221_v14 }
 0x7e2   : > { %v1299_v8 = vpop.f32.mrf.mxu0 }
 0x7e3   : > { %1331 = vst.msk [vmem:[%s224_s24 + $0x20] sm:$0xff] %vm240_vm1, %v1323_v1  ;;  %v1326_v4 = vadd.f32 %v1308_v3, %v1806_v21  ;;  %v1300_v33 = vadd.f32 %v1299_v8, %v1221_v14 }
 0x7e5   : > { %1334 = vst.msk [vmem:[%s224_s24 + $0x38] sm:$0xff] %vm240_vm1, %v1326_v4  ;;  %v1324_v6 = vadd.f32 %v1300_v33, %v1795_v15 }
 0x7e7   : > { %1332 = vst.msk [vmem:[%s224_s24 + $0x28] sm:$0xff] %vm240_vm1, %v1324_v6 }
 0x7e8 PF: > { %s15_s18 = sadd.s32 1, %s1684_s18  }
 0x7e9   : > { %p12_p4 = scmp.ge.s32.totalorder %s15_s18, 6  }
 0x7eb   :  { %14 = sbr.rel (!%p12_p4) target bundleno = 1 (0x1), region = 70 }

</bundles_post_ra>
